<compile_context>
chip_gen: v6e
topology: v6e:2x2x1
jax: 0.10.0
libtpu: 0.0.40
codegen_flags: <defaults>
</compile_context>

<pallas_src>
import functools

import jax
import jax.numpy as jnp
from jax.experimental import pallas as pl
from jax.experimental.pallas import tpu as pltpu

_LANE = 128      # vreg lane width
_TK_MAX = 512    # K-tile for the first (state @ W1) matmul
_TB_MAX = 256    # batch tile cap


def _round_up(x, m):
    return (x + m - 1) // m * m


def _cdiv(a, b):
    return (a + b - 1) // b


# --------------------------------------------------------------------------- #
# Kernel
# --------------------------------------------------------------------------- #
def fdm_kernel(state_ref, action_ref,
               w1_ref, b1_ref, w2_ref, b2_ref,
               w3h_ref, w3a_ref, b3_ref,
               w4_ref, b4_ref, w5_ref, b5_ref,
               hs_out_ref, pred_out_ref,
               acc_ref):
    """One (batch-tile, K-tile) grid step.

    Layer 1 accumulates over the K axis into `acc_ref` (f32).  Layers 2..5 and
    both output stores run only in the k == last finalize branch.
    """
    k = pl.program_id(1)

    @pl.when(k == 0)
    def _():
        acc_ref[...] = jnp.zeros_like(acc_ref)

    # state / W1 arrive in bf16; accumulate f32 on the MXU.
    acc_ref[...] += jnp.dot(state_ref[...], w1_ref[...],
                            preferred_element_type=jnp.float32)

    @pl.when(k == pl.num_programs(1) - 1)
    def _():
        # ---- encoder: ReLU(acc + b1) -> Linear -> ReLU ----
        h = jnp.maximum(acc_ref[...] + b1_ref[...], 0.0).astype(jnp.bfloat16)
        h_s = jnp.dot(h, w2_ref[...], preferred_element_type=jnp.float32) + b2_ref[...]
        h_s = jnp.maximum(h_s, 0.0)
        hs_out_ref[...] = h_s.astype(hs_out_ref.dtype)

        # ---- forward model: cat([h_s, a]) @ W3 == h_s @ W3_h + a @ W3_a ----
        h_s16 = h_s.astype(jnp.bfloat16)
        x = (jnp.dot(h_s16, w3h_ref[...], preferred_element_type=jnp.float32)
             + jnp.dot(action_ref[...], w3a_ref[...], preferred_element_type=jnp.float32)
             + b3_ref[...])
        x = jnp.maximum(x, 0.0).astype(jnp.bfloat16)
        x = jnp.dot(x, w4_ref[...], preferred_element_type=jnp.float32) + b4_ref[...]
        x = jnp.maximum(x, 0.0).astype(jnp.bfloat16)
        pred = jnp.dot(x, w5_ref[...], preferred_element_type=jnp.float32) + b5_ref[...]
        pred_out_ref[...] = pred.astype(pred_out_ref.dtype)


# --------------------------------------------------------------------------- #
# Wrapper
# --------------------------------------------------------------------------- #
@functools.partial(jax.jit, static_argnames=("hidden_dim", "use_pipeline_mode"))
def forward_dynamics_pallas(state, action, pp, *, hidden_dim, use_pipeline_mode=True):
    """state: (B, state_dim) f32, action: (B, action_dim) f32, pp: padded params."""
    B = state.shape[0]
    S_pad, H_pad = pp["w1"].shape
    A_pad = pp["w3a"].shape[0]

    # --- batch tiling: >= 2 grid steps when B > 8 so v7x can use both TCs ---
    B_pad = _round_up(max(B, 8), 8)
    if B_pad <= 8:
        TB = B_pad
    else:
        TB = min(_TB_MAX, _round_up(_cdiv(B_pad, 2), 8))
    B_pad = _round_up(B_pad, TB)

    # --- K tiling of the first matmul (S_pad is a multiple of TK by construction) ---
    TK = S_pad if S_pad <= _TK_MAX else _TK_MAX
    grid = (B_pad // TB, S_pad // TK)

    # Zero-pad + cast in one wrapper op: activations stream into the kernel in bf16.
    state_p = jnp.zeros((B_pad, S_pad), jnp.bfloat16).at[:B, :state.shape[1]].set(
        state.astype(jnp.bfloat16))
    action_p = jnp.zeros((B_pad, A_pad), jnp.bfloat16).at[:B, :action.shape[1]].set(
        action.astype(jnp.bfloat16))

    def resident(shape):
        # Same block index every grid step -> DMA'd once, stays in VMEM.
        idx = lambda i, k: (0,) * len(shape)
        if use_pipeline_mode:
            return pl.BlockSpec(shape, idx, pipeline_mode=pl.Buffered(1))
        return pl.BlockSpec(shape, idx)

    in_specs = [
        pl.BlockSpec((TB, TK), lambda i, k: (i, k)),        # state tile
        pl.BlockSpec((TB, A_pad), lambda i, k: (i, 0)),     # action tile
        pl.BlockSpec((TK, H_pad), lambda i, k: (k, 0)),     # w1 K-slab (double-buffered)
        resident(pp["b1"].shape),
        resident(pp["w2"].shape), resident(pp["b2"].shape),
        resident(pp["w3h"].shape), resident(pp["w3a"].shape), resident(pp["b3"].shape),
        resident(pp["w4"].shape), resident(pp["b4"].shape),
        resident(pp["w5"].shape), resident(pp["b5"].shape),
    ]
    out_specs = (pl.BlockSpec((TB, H_pad), lambda i, k: (i, 0)),
                 pl.BlockSpec((TB, H_pad), lambda i, k: (i, 0)))

    # --- VMEM budget: resident weights + pipelined tiles + accumulator ---
    resident_bytes = sum(int(v.size) * v.dtype.itemsize
                         for name, v in pp.items() if name != "w1")
    if not use_pipeline_mode:
        resident_bytes *= 2                              # default double buffering
    w1_slab_bytes = 2 * TK * H_pad * 2                   # bf16, double-buffered
    act_in_bytes = 2 * TB * (TK + A_pad) * 2             # bf16, double-buffered
    act_out_bytes = 2 * 2 * TB * H_pad * 2               # 2 outputs, bf16, double-buffered
    acc_bytes = TB * H_pad * 4                           # f32 scratch accumulator
    need = (resident_bytes + w1_slab_bytes + act_in_bytes + act_out_bytes
            + acc_bytes + (4 << 20))                     # + compiler scratch slack
    try:
        vmem_cap = int(pltpu.get_tpu_info().vmem_capacity_bytes)
    except Exception:
        vmem_cap = 64 << 20                              # safe floor (v7x per-TC VMEM)
    vmem_limit = int(max(32 << 20, min(need, vmem_cap - (8 << 20))))

    hs_p, pred_p = pl.pallas_call(
        fdm_kernel,
        out_shape=(jax.ShapeDtypeStruct((B_pad, H_pad), jnp.bfloat16),
                   jax.ShapeDtypeStruct((B_pad, H_pad), jnp.bfloat16)),
        grid_spec=pltpu.PrefetchScalarGridSpec(
            num_scalar_prefetch=0,
            grid=grid,
            in_specs=in_specs,
            out_specs=out_specs,
            scratch_shapes=[pltpu.VMEM((TB, H_pad), jnp.float32)],
        ),
        compiler_params=pltpu.CompilerParams(
            dimension_semantics=("parallel", "arbitrary"),   # batch -> both TCs on v7x
            vmem_limit_bytes=vmem_limit,
        ),
    )(state_p, action_p,
      pp["w1"], pp["b1"], pp["w2"], pp["b2"],
      pp["w3h"], pp["w3a"], pp["b3"],
      pp["w4"], pp["b4"], pp["w5"], pp["b5"])

    # Match the PyTorch module's f32 interface; padded rows/cols sliced off.
    return (hs_p[:B, :hidden_dim].astype(jnp.float32),
            pred_p[:B, :hidden_dim].astype(jnp.float32))


# --------------------------------------------------------------------------- #
# Parameter construction (PyTorch nn.Linear-style init), padding & reference
# --------------------------------------------------------------------------- #
def init_params(key, state_dim, action_dim, hidden_dim):
    def linear(key, fan_in, fan_out):
        kw, kb = jax.random.split(key)
        bound = 1.0 / jnp.sqrt(fan_in)
        w = jax.random.uniform(kw, (fan_in, fan_out), jnp.float32, -bound, bound)
        b = jax.random.uniform(kb, (fan_out,), jnp.float32, -bound, bound)
        return w, b

    k1, k2, k3, k4, k5 = jax.random.split(key, 5)
    w1, b1 = linear(k1, state_dim, hidden_dim)
    w2, b2 = linear(k2, hidden_dim, hidden_dim)
    w3, b3 = linear(k3, hidden_dim + action_dim, hidden_dim)
    w4, b4 = linear(k4, hidden_dim, hidden_dim)
    w5, b5 = linear(k5, hidden_dim, hidden_dim)
    return {"w1": w1, "b1": b1, "w2": w2, "b2": b2, "w3": w3, "b3": b3,
            "w4": w4, "b4": b4, "w5": w5, "b5": b5}


def pad_and_cast_params(params, state_dim, action_dim, hidden_dim):
    """Zero-pad to lane-aligned shapes; weights -> bf16, biases -> f32 (1, N).

    The state axis is additionally padded to a multiple of the K tile so the
    reduction grid axis divides evenly for very large observations.
    """
    S_pad = _round_up(state_dim, _LANE)
    if S_pad > _TK_MAX:
        S_pad = _round_up(S_pad, _TK_MAX)
    A_pad = _round_up(action_dim, _LANE)
    H_pad = _round_up(hidden_dim, _LANE)

    def pad_w(w, rows, cols):
        out = jnp.zeros((rows, cols), jnp.bfloat16)
        return out.at[: w.shape[0], : w.shape[1]].set(w.astype(jnp.bfloat16))

    def pad_b(b, cols):
        return jnp.zeros((1, cols), jnp.float32).at[0, : b.shape[0]].set(b)

    w3h = params["w3"][:hidden_dim, :]
    w3a = params["w3"][hidden_dim:, :]
    return {
        "w1": pad_w(params["w1"], S_pad, H_pad), "b1": pad_b(params["b1"], H_pad),
        "w2": pad_w(params["w2"], H_pad, H_pad), "b2": pad_b(params["b2"], H_pad),
        "w3h": pad_w(w3h, H_pad, H_pad), "w3a": pad_w(w3a, A_pad, H_pad),
        "b3": pad_b(params["b3"], H_pad),
        "w4": pad_w(params["w4"], H_pad, H_pad), "b4": pad_b(params["b4"], H_pad),
        "w5": pad_w(params["w5"], H_pad, H_pad), "b5": pad_b(params["b5"], H_pad),
    }


def reference_forward(state, action, p):
    """Pure-JAX mirror of the kernel arithmetic (bf16 operands, f32 accumulate)."""
    def lin(x, w, b):
        return jnp.dot(x.astype(jnp.bfloat16), w.astype(jnp.bfloat16),
                       preferred_element_type=jnp.float32) + b
    h = jnp.maximum(lin(state, p["w1"], p["b1"]), 0.0)
    h_s = jnp.maximum(lin(h, p["w2"], p["b2"]), 0.0)
    x = jnp.concatenate([h_s, action], axis=-1)
    x = jnp.maximum(lin(x, p["w3"], p["b3"]), 0.0)
    x = jnp.maximum(lin(x, p["w4"], p["b4"]), 0.0)
    return h_s, lin(x, p["w5"], p["b5"])


# --------------------------------------------------------------------------- #
# Demo / self-test
# --------------------------------------------------------------------------- #
if __name__ == "__main__":
    # Small shapes consistent with the module: obs space (4, 4, 4) -> state_dim=64,
    # action_dim=4, module-default hidden_dim=128, batch=2.
    B, OBS_SHAPE, ACTION_DIM, HIDDEN = 2, (4, 4, 4), 4, 128
    STATE_DIM = OBS_SHAPE[0] * OBS_SHAPE[1] * OBS_SHAPE[2]

    key = jax.random.PRNGKey(0)
    k_state, k_action, k_params = jax.random.split(key, 3)

    obs = jax.random.normal(k_state, (B,) + OBS_SHAPE, jnp.float32)
    state = obs.reshape(B, -1)                       # state.view(B, -1)
    action = jax.random.normal(k_action, (B, ACTION_DIM), jnp.float32)

    params = init_params(k_params, STATE_DIM, ACTION_DIM, HIDDEN)
    padded = pad_and_cast_params(params, STATE_DIM, ACTION_DIM, HIDDEN)

    try:
        h_s, pred_h_next = forward_dynamics_pallas(state, action, padded,
                                                   hidden_dim=HIDDEN)
    except Exception:
        # Fallback if this JAX build rejects pipeline_mode=pl.Buffered(1) on
        # the resident-weight BlockSpecs: rerun with default double buffering.
        h_s, pred_h_next = forward_dynamics_pallas(state, action, padded,
                                                   hidden_dim=HIDDEN,
                                                   use_pipeline_mode=False)
    jax.block_until_ready((h_s, pred_h_next))

    # Correctness check against the pure-JAX reference (same bf16/f32 arithmetic;
    # kernel outputs are additionally rounded to bf16 on the way out).
    h_s_ref, pred_ref = reference_forward(state, action, params)
    assert h_s.shape == (B, HIDDEN) and pred_h_next.shape == (B, HIDDEN)
    assert jnp.allclose(h_s, h_s_ref, atol=2e-2, rtol=2e-2)
    assert jnp.allclose(pred_h_next, pred_ref, atol=2e-2, rtol=2e-2)

    print("KERNEL_OK")
</pallas_src>

<mosaic_0001>
module attributes {stable_mosaic.version = 11 : i64} {
  func.func @fdm_kernel(%arg0: i32, %arg1: i32, %arg2: memref<8x128xbf16, #tpu.memory_space<vmem>>, %arg3: memref<8x128xbf16, #tpu.memory_space<vmem>>, %arg4: memref<128x128xbf16, #tpu.memory_space<vmem>>, %arg5: memref<1x128xf32, #tpu.memory_space<vmem>>, %arg6: memref<128x128xbf16, #tpu.memory_space<vmem>>, %arg7: memref<1x128xf32, #tpu.memory_space<vmem>>, %arg8: memref<128x128xbf16, #tpu.memory_space<vmem>>, %arg9: memref<128x128xbf16, #tpu.memory_space<vmem>>, %arg10: memref<1x128xf32, #tpu.memory_space<vmem>>, %arg11: memref<128x128xbf16, #tpu.memory_space<vmem>>, %arg12: memref<1x128xf32, #tpu.memory_space<vmem>>, %arg13: memref<128x128xbf16, #tpu.memory_space<vmem>>, %arg14: memref<1x128xf32, #tpu.memory_space<vmem>>, %arg15: memref<8x128xbf16, #tpu.memory_space<vmem>>, %arg16: memref<8x128xbf16, #tpu.memory_space<vmem>>, %arg17: memref<8x128xf32, #tpu.memory_space<vmem>>) attributes {dimension_semantics = [#tpu.dimension_semantics<parallel>, #tpu.dimension_semantics<arbitrary>], iteration_bounds = array<i64: 1, 1>, scalar_prefetch = 0 : i64, scratch_operands = 1 : i64, tpu.core_type = #tpu.core_type<tc>, window_params = [{transform_indices = @transform_0, window_bounds = array<i64: 8, 128>}, {transform_indices = @transform_1, window_bounds = array<i64: 8, 128>}, {transform_indices = @transform_2, window_bounds = array<i64: 128, 128>}, {pipeline_mode = #tpu.pipeline_mode<synchronous>, transform_indices = @transform_3, window_bounds = array<i64: 1, 128>}, {pipeline_mode = #tpu.pipeline_mode<synchronous>, transform_indices = @transform_4, window_bounds = array<i64: 128, 128>}, {pipeline_mode = #tpu.pipeline_mode<synchronous>, transform_indices = @transform_5, window_bounds = array<i64: 1, 128>}, {pipeline_mode = #tpu.pipeline_mode<synchronous>, transform_indices = @transform_6, window_bounds = array<i64: 128, 128>}, {pipeline_mode = #tpu.pipeline_mode<synchronous>, transform_indices = @transform_7, window_bounds = array<i64: 128, 128>}, {pipeline_mode = #tpu.pipeline_mode<synchronous>, transform_indices = @transform_8, window_bounds = array<i64: 1, 128>}, {pipeline_mode = #tpu.pipeline_mode<synchronous>, transform_indices = @transform_9, window_bounds = array<i64: 128, 128>}, {pipeline_mode = #tpu.pipeline_mode<synchronous>, transform_indices = @transform_10, window_bounds = array<i64: 1, 128>}, {pipeline_mode = #tpu.pipeline_mode<synchronous>, transform_indices = @transform_11, window_bounds = array<i64: 128, 128>}, {pipeline_mode = #tpu.pipeline_mode<synchronous>, transform_indices = @transform_12, window_bounds = array<i64: 1, 128>}, {transform_indices = @transform_13, window_bounds = array<i64: 8, 128>}, {transform_indices = @transform_14, window_bounds = array<i64: 8, 128>}]} {
    %c0_i32 = arith.constant 0 : i32
    %0 = arith.cmpi eq, %arg1, %c0_i32 : i32
    %1 = arith.extui %0 : i1 to i32
    %c0_i32_0 = arith.constant 0 : i32
    %2 = arith.cmpi ne, %1, %c0_i32_0 : i32
    scf.if %2 {
      %cst_10 = arith.constant 0.000000e+00 : f32
      %12 = vector.broadcast %cst_10 : f32 to vector<8x128xf32>
      %c0_11 = arith.constant 0 : index
      %c0_12 = arith.constant 0 : index
      %13 = vector.load %arg17[%c0_11, %c0_12] : memref<8x128xf32, #tpu.memory_space<vmem>>, vector<8x128xf32>
      tpu.vector_store %arg17[%c0_11, %c0_12], %12 {strides = array<i32>} : memref<8x128xf32, #tpu.memory_space<vmem>>, vector<8x128xf32>,
    } else {
    }
    %c0 = arith.constant 0 : index
    %c0_1 = arith.constant 0 : index
    %3 = vector.load %arg17[%c0, %c0_1] : memref<8x128xf32, #tpu.memory_space<vmem>>, vector<8x128xf32>
    %c0_2 = arith.constant 0 : index
    %c0_3 = arith.constant 0 : index
    %4 = vector.load %arg2[%c0_2, %c0_3] : memref<8x128xbf16, #tpu.memory_space<vmem>>, vector<8x128xbf16>
    %c0_4 = arith.constant 0 : index
    %c0_5 = arith.constant 0 : index
    %5 = vector.load %arg4[%c0_4, %c0_5] : memref<128x128xbf16, #tpu.memory_space<vmem>>, vector<128x128xbf16>
    %cst = arith.constant dense<0.000000e+00> : vector<8x128xf32>
    %6 = tpu.matmul %4, %5, %cst {dimension_numbers = #tpu.dot_dimension_numbers<[1], [0], [0], [1], [0, 0, 1, 1], [], []>} : vector<8x128xbf16>, vector<128x128xbf16>, vector<8x128xf32> -> vector<8x128xf32>
    %7 = arith.addf %3, %6 : vector<8x128xf32>
    %c0_6 = arith.constant 0 : index
    %c0_7 = arith.constant 0 : index
    %8 = vector.load %arg17[%c0_6, %c0_7] : memref<8x128xf32, #tpu.memory_space<vmem>>, vector<8x128xf32>
    tpu.vector_store %arg17[%c0_6, %c0_7], %7 {strides = array<i32>} : memref<8x128xf32, #tpu.memory_space<vmem>>, vector<8x128xf32>,
    %c0_i32_8 = arith.constant 0 : i32
    %9 = arith.cmpi eq, %arg1, %c0_i32_8 : i32
    %10 = arith.extui %9 : i1 to i32
    %c0_i32_9 = arith.constant 0 : i32
    %11 = arith.cmpi ne, %10, %c0_i32_9 : i32
    scf.if %11 {
      %c0_10 = arith.constant 0 : index
      %c0_11 = arith.constant 0 : index
      %12 = vector.load %arg17[%c0_10, %c0_11] : memref<8x128xf32, #tpu.memory_space<vmem>>, vector<8x128xf32>
      %c0_12 = arith.constant 0 : index
      %c0_13 = arith.constant 0 : index
      %13 = vector.load %arg5[%c0_12, %c0_13] : memref<1x128xf32, #tpu.memory_space<vmem>>, vector<1x128xf32>
      %14 = vector.broadcast %13 : vector<1x128xf32> to vector<8x128xf32>
      %15 = arith.addf %12, %14 : vector<8x128xf32>
      %cst_14 = arith.constant 0.000000e+00 : f32
      %16 = vector.broadcast %cst_14 : f32 to vector<8x128xf32>
      %17 = arith.maximumf %15, %16 : vector<8x128xf32>
      %18 = arith.truncf %17 : vector<8x128xf32> to vector<8x128xbf16>
      %c0_15 = arith.constant 0 : index
      %c0_16 = arith.constant 0 : index
      %19 = vector.load %arg6[%c0_15, %c0_16] : memref<128x128xbf16, #tpu.memory_space<vmem>>, vector<128x128xbf16>
      %cst_17 = arith.constant dense<0.000000e+00> : vector<8x128xf32>
      %20 = tpu.matmul %18, %19, %cst_17 {dimension_numbers = #tpu.dot_dimension_numbers<[1], [0], [0], [1], [0, 0, 1, 1], [], []>} : vector<8x128xbf16>, vector<128x128xbf16>, vector<8x128xf32> -> vector<8x128xf32>
      %c0_18 = arith.constant 0 : index
      %c0_19 = arith.constant 0 : index
      %21 = vector.load %arg7[%c0_18, %c0_19] : memref<1x128xf32, #tpu.memory_space<vmem>>, vector<1x128xf32>
      %22 = vector.broadcast %21 : vector<1x128xf32> to vector<8x128xf32>
      %23 = arith.addf %20, %22 : vector<8x128xf32>
      %cst_20 = arith.constant 0.000000e+00 : f32
      %24 = vector.broadcast %cst_20 : f32 to vector<8x128xf32>
      %25 = arith.maximumf %23, %24 : vector<8x128xf32>
      %26 = arith.truncf %25 : vector<8x128xf32> to vector<8x128xbf16>
      %c0_21 = arith.constant 0 : index
      %c0_22 = arith.constant 0 : index
      %27 = vector.load %arg15[%c0_21, %c0_22] : memref<8x128xbf16, #tpu.memory_space<vmem>>, vector<8x128xbf16>
      tpu.vector_store %arg15[%c0_21, %c0_22], %26 {strides = array<i32>} : memref<8x128xbf16, #tpu.memory_space<vmem>>, vector<8x128xbf16>,
      %28 = arith.truncf %25 : vector<8x128xf32> to vector<8x128xbf16>
      %c0_23 = arith.constant 0 : index
      %c0_24 = arith.constant 0 : index
      %29 = vector.load %arg8[%c0_23, %c0_24] : memref<128x128xbf16, #tpu.memory_space<vmem>>, vector<128x128xbf16>
      %cst_25 = arith.constant dense<0.000000e+00> : vector<8x128xf32>
      %30 = tpu.matmul %28, %29, %cst_25 {dimension_numbers = #tpu.dot_dimension_numbers<[1], [0], [0], [1], [0, 0, 1, 1], [], []>} : vector<8x128xbf16>, vector<128x128xbf16>, vector<8x128xf32> -> vector<8x128xf32>
      %c0_26 = arith.constant 0 : index
      %c0_27 = arith.constant 0 : index
      %31 = vector.load %arg3[%c0_26, %c0_27] : memref<8x128xbf16, #tpu.memory_space<vmem>>, vector<8x128xbf16>
      %c0_28 = arith.constant 0 : index
      %c0_29 = arith.constant 0 : index
      %32 = vector.load %arg9[%c0_28, %c0_29] : memref<128x128xbf16, #tpu.memory_space<vmem>>, vector<128x128xbf16>
      %cst_30 = arith.constant dense<0.000000e+00> : vector<8x128xf32>
      %33 = tpu.matmul %31, %32, %cst_30 {dimension_numbers = #tpu.dot_dimension_numbers<[1], [0], [0], [1], [0, 0, 1, 1], [], []>} : vector<8x128xbf16>, vector<128x128xbf16>, vector<8x128xf32> -> vector<8x128xf32>
      %34 = arith.addf %30, %33 : vector<8x128xf32>
      %c0_31 = arith.constant 0 : index
      %c0_32 = arith.constant 0 : index
      %35 = vector.load %arg10[%c0_31, %c0_32] : memref<1x128xf32, #tpu.memory_space<vmem>>, vector<1x128xf32>
      %36 = vector.broadcast %35 : vector<1x128xf32> to vector<8x128xf32>
      %37 = arith.addf %34, %36 : vector<8x128xf32>
      %cst_33 = arith.constant 0.000000e+00 : f32
      %38 = vector.broadcast %cst_33 : f32 to vector<8x128xf32>
      %39 = arith.maximumf %37, %38 : vector<8x128xf32>
      %40 = arith.truncf %39 : vector<8x128xf32> to vector<8x128xbf16>
      %c0_34 = arith.constant 0 : index
      %c0_35 = arith.constant 0 : index
      %41 = vector.load %arg11[%c0_34, %c0_35] : memref<128x128xbf16, #tpu.memory_space<vmem>>, vector<128x128xbf16>
      %cst_36 = arith.constant dense<0.000000e+00> : vector<8x128xf32>
      %42 = tpu.matmul %40, %41, %cst_36 {dimension_numbers = #tpu.dot_dimension_numbers<[1], [0], [0], [1], [0, 0, 1, 1], [], []>} : vector<8x128xbf16>, vector<128x128xbf16>, vector<8x128xf32> -> vector<8x128xf32>
      %c0_37 = arith.constant 0 : index
      %c0_38 = arith.constant 0 : index
      %43 = vector.load %arg12[%c0_37, %c0_38] : memref<1x128xf32, #tpu.memory_space<vmem>>, vector<1x128xf32>
      %44 = vector.broadcast %43 : vector<1x128xf32> to vector<8x128xf32>
      %45 = arith.addf %42, %44 : vector<8x128xf32>
      %cst_39 = arith.constant 0.000000e+00 : f32
      %46 = vector.broadcast %cst_39 : f32 to vector<8x128xf32>
      %47 = arith.maximumf %45, %46 : vector<8x128xf32>
      %48 = arith.truncf %47 : vector<8x128xf32> to vector<8x128xbf16>
      %c0_40 = arith.constant 0 : index
      %c0_41 = arith.constant 0 : index
      %49 = vector.load %arg13[%c0_40, %c0_41] : memref<128x128xbf16, #tpu.memory_space<vmem>>, vector<128x128xbf16>
      %cst_42 = arith.constant dense<0.000000e+00> : vector<8x128xf32>
      %50 = tpu.matmul %48, %49, %cst_42 {dimension_numbers = #tpu.dot_dimension_numbers<[1], [0], [0], [1], [0, 0, 1, 1], [], []>} : vector<8x128xbf16>, vector<128x128xbf16>, vector<8x128xf32> -> vector<8x128xf32>
      %c0_43 = arith.constant 0 : index
      %c0_44 = arith.constant 0 : index
      %51 = vector.load %arg14[%c0_43, %c0_44] : memref<1x128xf32, #tpu.memory_space<vmem>>, vector<1x128xf32>
      %52 = vector.broadcast %51 : vector<1x128xf32> to vector<8x128xf32>
      %53 = arith.addf %50, %52 : vector<8x128xf32>
      %54 = arith.truncf %53 : vector<8x128xf32> to vector<8x128xbf16>
      %c0_45 = arith.constant 0 : index
      %c0_46 = arith.constant 0 : index
      %55 = vector.load %arg16[%c0_45, %c0_46] : memref<8x128xbf16, #tpu.memory_space<vmem>>, vector<8x128xbf16>
      tpu.vector_store %arg16[%c0_45, %c0_46], %54 {strides = array<i32>} : memref<8x128xbf16, #tpu.memory_space<vmem>>, vector<8x128xbf16>,
    } else {
    }
    return
  }
  func.func @transform_0(%arg0: i32, %arg1: i32) -> (i32, i32) {
    %c0_i32 = arith.constant 0 : i32
    return %arg0, %arg1 : i32, i32
  }
  func.func @transform_1(%arg0: i32, %arg1: i32) -> (i32, i32) {
    %c0_i32 = arith.constant 0 : i32
    %c0_i32_0 = arith.constant 0 : i32
    return %arg0, %c0_i32 : i32, i32
  }
  func.func @transform_2(%arg0: i32, %arg1: i32) -> (i32, i32) {
    %c0_i32 = arith.constant 0 : i32
    %c0_i32_0 = arith.constant 0 : i32
    return %arg1, %c0_i32 : i32, i32
  }
  func.func @transform_3(%arg0: i32, %arg1: i32) -> (i32, i32) {
    %c0_i32 = arith.constant 0 : i32
    %c0_i32_0 = arith.constant 0 : i32
    %c0_i32_1 = arith.constant 0 : i32
    return %c0_i32, %c0_i32_0 : i32, i32
  }
  func.func @transform_4(%arg0: i32, %arg1: i32) -> (i32, i32) {
    %c0_i32 = arith.constant 0 : i32
    %c0_i32_0 = arith.constant 0 : i32
    %c0_i32_1 = arith.constant 0 : i32
    return %c0_i32, %c0_i32_0 : i32, i32
  }
  func.func @transform_5(%arg0: i32, %arg1: i32) -> (i32, i32) {
    %c0_i32 = arith.constant 0 : i32
    %c0_i32_0 = arith.constant 0 : i32
    %c0_i32_1 = arith.constant 0 : i32
    return %c0_i32, %c0_i32_0 : i32, i32
  }
  func.func @transform_6(%arg0: i32, %arg1: i32) -> (i32, i32) {
    %c0_i32 = arith.constant 0 : i32
    %c0_i32_0 = arith.constant 0 : i32
    %c0_i32_1 = arith.constant 0 : i32
    return %c0_i32, %c0_i32_0 : i32, i32
  }
  func.func @transform_7(%arg0: i32, %arg1: i32) -> (i32, i32) {
    %c0_i32 = arith.constant 0 : i32
    %c0_i32_0 = arith.constant 0 : i32
    %c0_i32_1 = arith.constant 0 : i32
    return %c0_i32, %c0_i32_0 : i32, i32
  }
  func.func @transform_8(%arg0: i32, %arg1: i32) -> (i32, i32) {
    %c0_i32 = arith.constant 0 : i32
    %c0_i32_0 = arith.constant 0 : i32
    %c0_i32_1 = arith.constant 0 : i32
    return %c0_i32, %c0_i32_0 : i32, i32
  }
  func.func @transform_9(%arg0: i32, %arg1: i32) -> (i32, i32) {
    %c0_i32 = arith.constant 0 : i32
    %c0_i32_0 = arith.constant 0 : i32
    %c0_i32_1 = arith.constant 0 : i32
    return %c0_i32, %c0_i32_0 : i32, i32
  }
  func.func @transform_10(%arg0: i32, %arg1: i32) -> (i32, i32) {
    %c0_i32 = arith.constant 0 : i32
    %c0_i32_0 = arith.constant 0 : i32
    %c0_i32_1 = arith.constant 0 : i32
    return %c0_i32, %c0_i32_0 : i32, i32
  }
  func.func @transform_11(%arg0: i32, %arg1: i32) -> (i32, i32) {
    %c0_i32 = arith.constant 0 : i32
    %c0_i32_0 = arith.constant 0 : i32
    %c0_i32_1 = arith.constant 0 : i32
    return %c0_i32, %c0_i32_0 : i32, i32
  }
  func.func @transform_12(%arg0: i32, %arg1: i32) -> (i32, i32) {
    %c0_i32 = arith.constant 0 : i32
    %c0_i32_0 = arith.constant 0 : i32
    %c0_i32_1 = arith.constant 0 : i32
    return %c0_i32, %c0_i32_0 : i32, i32
  }
  func.func @transform_13(%arg0: i32, %arg1: i32) -> (i32, i32) {
    %c0_i32 = arith.constant 0 : i32
    %c0_i32_0 = arith.constant 0 : i32
    return %arg0, %c0_i32 : i32, i32
  }
  func.func @transform_14(%arg0: i32, %arg1: i32) -> (i32, i32) {
    %c0_i32 = arith.constant 0 : i32
    %c0_i32_0 = arith.constant 0 : i32
    return %arg0, %c0_i32 : i32, i32
  }
}

module attributes {stable_mosaic.version = 11 : i64} {
  func.func @fdm_kernel(%arg0: i32, %arg1: i32, %arg2: memref<8x128xbf16, #tpu.memory_space<vmem>>, %arg3: memref<8x128xbf16, #tpu.memory_space<vmem>>, %arg4: memref<128x128xbf16, #tpu.memory_space<vmem>>, %arg5: memref<1x128xf32, #tpu.memory_space<vmem>>, %arg6: memref<128x128xbf16, #tpu.memory_space<vmem>>, %arg7: memref<1x128xf32, #tpu.memory_space<vmem>>, %arg8: memref<128x128xbf16, #tpu.memory_space<vmem>>, %arg9: memref<128x128xbf16, #tpu.memory_space<vmem>>, %arg10: memref<1x128xf32, #tpu.memory_space<vmem>>, %arg11: memref<128x128xbf16, #tpu.memory_space<vmem>>, %arg12: memref<1x128xf32, #tpu.memory_space<vmem>>, %arg13: memref<128x128xbf16, #tpu.memory_space<vmem>>, %arg14: memref<1x128xf32, #tpu.memory_space<vmem>>, %arg15: memref<8x128xbf16, #tpu.memory_space<vmem>>, %arg16: memref<8x128xbf16, #tpu.memory_space<vmem>>, %arg17: memref<8x128xf32, #tpu.memory_space<vmem>>) attributes {dimension_semantics = [#tpu.dimension_semantics<parallel>, #tpu.dimension_semantics<arbitrary>], iteration_bounds = array<i64: 1, 1>, scalar_prefetch = 0 : i64, scratch_operands = 1 : i64, tpu.core_type = #tpu.core_type<tc>, window_params = [{transform_indices = @transform_0, window_bounds = array<i64: 8, 128>}, {transform_indices = @transform_1, window_bounds = array<i64: 8, 128>}, {transform_indices = @transform_2, window_bounds = array<i64: 128, 128>}, {pipeline_mode = #tpu.pipeline_mode<synchronous>, transform_indices = @transform_3, window_bounds = array<i64: 1, 128>}, {pipeline_mode = #tpu.pipeline_mode<synchronous>, transform_indices = @transform_4, window_bounds = array<i64: 128, 128>}, {pipeline_mode = #tpu.pipeline_mode<synchronous>, transform_indices = @transform_5, window_bounds = array<i64: 1, 128>}, {pipeline_mode = #tpu.pipeline_mode<synchronous>, transform_indices = @transform_6, window_bounds = array<i64: 128, 128>}, {pipeline_mode = #tpu.pipeline_mode<synchronous>, transform_indices = @transform_7, window_bounds = array<i64: 128, 128>}, {pipeline_mode = #tpu.pipeline_mode<synchronous>, transform_indices = @transform_8, window_bounds = array<i64: 1, 128>}, {pipeline_mode = #tpu.pipeline_mode<synchronous>, transform_indices = @transform_9, window_bounds = array<i64: 128, 128>}, {pipeline_mode = #tpu.pipeline_mode<synchronous>, transform_indices = @transform_10, window_bounds = array<i64: 1, 128>}, {pipeline_mode = #tpu.pipeline_mode<synchronous>, transform_indices = @transform_11, window_bounds = array<i64: 128, 128>}, {pipeline_mode = #tpu.pipeline_mode<synchronous>, transform_indices = @transform_12, window_bounds = array<i64: 1, 128>}, {transform_indices = @transform_13, window_bounds = array<i64: 8, 128>}, {transform_indices = @transform_14, window_bounds = array<i64: 8, 128>}]} {
    %c0_i32 = arith.constant 0 : i32
    %0 = arith.cmpi eq, %arg1, %c0_i32 : i32
    %1 = arith.extui %0 : i1 to i32
    %c0_i32_0 = arith.constant 0 : i32
    %2 = arith.cmpi ne, %1, %c0_i32_0 : i32
    scf.if %2 {
      %cst_10 = arith.constant 0.000000e+00 : f32
      %12 = vector.broadcast %cst_10 : f32 to vector<8x128xf32>
      %c0_11 = arith.constant 0 : index
      %c0_12 = arith.constant 0 : index
      %13 = vector.load %arg17[%c0_11, %c0_12] : memref<8x128xf32, #tpu.memory_space<vmem>>, vector<8x128xf32>
      tpu.vector_store %arg17[%c0_11, %c0_12], %12 {strides = array<i32>} : memref<8x128xf32, #tpu.memory_space<vmem>>, vector<8x128xf32>,
    } else {
    }
    %c0 = arith.constant 0 : index
    %c0_1 = arith.constant 0 : index
    %3 = vector.load %arg17[%c0, %c0_1] : memref<8x128xf32, #tpu.memory_space<vmem>>, vector<8x128xf32>
    %c0_2 = arith.constant 0 : index
    %c0_3 = arith.constant 0 : index
    %4 = vector.load %arg2[%c0_2, %c0_3] : memref<8x128xbf16, #tpu.memory_space<vmem>>, vector<8x128xbf16>
    %c0_4 = arith.constant 0 : index
    %c0_5 = arith.constant 0 : index
    %5 = vector.load %arg4[%c0_4, %c0_5] : memref<128x128xbf16, #tpu.memory_space<vmem>>, vector<128x128xbf16>
    %cst = arith.constant dense<0.000000e+00> : vector<8x128xf32>
    %6 = tpu.matmul %4, %5, %cst {dimension_numbers = #tpu.dot_dimension_numbers<[1], [0], [0], [1], [0, 0, 1, 1], [], []>} : vector<8x128xbf16>, vector<128x128xbf16>, vector<8x128xf32> -> vector<8x128xf32>
    %7 = arith.addf %3, %6 : vector<8x128xf32>
    %c0_6 = arith.constant 0 : index
    %c0_7 = arith.constant 0 : index
    %8 = vector.load %arg17[%c0_6, %c0_7] : memref<8x128xf32, #tpu.memory_space<vmem>>, vector<8x128xf32>
    tpu.vector_store %arg17[%c0_6, %c0_7], %7 {strides = array<i32>} : memref<8x128xf32, #tpu.memory_space<vmem>>, vector<8x128xf32>,
    %c0_i32_8 = arith.constant 0 : i32
    %9 = arith.cmpi eq, %arg1, %c0_i32_8 : i32
    %10 = arith.extui %9 : i1 to i32
    %c0_i32_9 = arith.constant 0 : i32
    %11 = arith.cmpi ne, %10, %c0_i32_9 : i32
    scf.if %11 {
      %c0_10 = arith.constant 0 : index
      %c0_11 = arith.constant 0 : index
      %12 = vector.load %arg17[%c0_10, %c0_11] : memref<8x128xf32, #tpu.memory_space<vmem>>, vector<8x128xf32>
      %c0_12 = arith.constant 0 : index
      %c0_13 = arith.constant 0 : index
      %13 = vector.load %arg5[%c0_12, %c0_13] : memref<1x128xf32, #tpu.memory_space<vmem>>, vector<1x128xf32>
      %14 = vector.broadcast %13 : vector<1x128xf32> to vector<8x128xf32>
      %15 = arith.addf %12, %14 : vector<8x128xf32>
      %cst_14 = arith.constant 0.000000e+00 : f32
      %16 = vector.broadcast %cst_14 : f32 to vector<8x128xf32>
      %17 = arith.maximumf %15, %16 : vector<8x128xf32>
      %18 = arith.truncf %17 : vector<8x128xf32> to vector<8x128xbf16>
      %c0_15 = arith.constant 0 : index
      %c0_16 = arith.constant 0 : index
      %19 = vector.load %arg6[%c0_15, %c0_16] : memref<128x128xbf16, #tpu.memory_space<vmem>>, vector<128x128xbf16>
      %cst_17 = arith.constant dense<0.000000e+00> : vector<8x128xf32>
      %20 = tpu.matmul %18, %19, %cst_17 {dimension_numbers = #tpu.dot_dimension_numbers<[1], [0], [0], [1], [0, 0, 1, 1], [], []>} : vector<8x128xbf16>, vector<128x128xbf16>, vector<8x128xf32> -> vector<8x128xf32>
      %c0_18 = arith.constant 0 : index
      %c0_19 = arith.constant 0 : index
      %21 = vector.load %arg7[%c0_18, %c0_19] : memref<1x128xf32, #tpu.memory_space<vmem>>, vector<1x128xf32>
      %22 = vector.broadcast %21 : vector<1x128xf32> to vector<8x128xf32>
      %23 = arith.addf %20, %22 : vector<8x128xf32>
      %cst_20 = arith.constant 0.000000e+00 : f32
      %24 = vector.broadcast %cst_20 : f32 to vector<8x128xf32>
      %25 = arith.maximumf %23, %24 : vector<8x128xf32>
      %26 = arith.truncf %25 : vector<8x128xf32> to vector<8x128xbf16>
      %c0_21 = arith.constant 0 : index
      %c0_22 = arith.constant 0 : index
      %27 = vector.load %arg15[%c0_21, %c0_22] : memref<8x128xbf16, #tpu.memory_space<vmem>>, vector<8x128xbf16>
      tpu.vector_store %arg15[%c0_21, %c0_22], %26 {strides = array<i32>} : memref<8x128xbf16, #tpu.memory_space<vmem>>, vector<8x128xbf16>,
      %28 = arith.truncf %25 : vector<8x128xf32> to vector<8x128xbf16>
      %c0_23 = arith.constant 0 : index
      %c0_24 = arith.constant 0 : index
      %29 = vector.load %arg8[%c0_23, %c0_24] : memref<128x128xbf16, #tpu.memory_space<vmem>>, vector<128x128xbf16>
      %cst_25 = arith.constant dense<0.000000e+00> : vector<8x128xf32>
      %30 = tpu.matmul %28, %29, %cst_25 {dimension_numbers = #tpu.dot_dimension_numbers<[1], [0], [0], [1], [0, 0, 1, 1], [], []>} : vector<8x128xbf16>, vector<128x128xbf16>, vector<8x128xf32> -> vector<8x128xf32>
      %c0_26 = arith.constant 0 : index
      %c0_27 = arith.constant 0 : index
      %31 = vector.load %arg3[%c0_26, %c0_27] : memref<8x128xbf16, #tpu.memory_space<vmem>>, vector<8x128xbf16>
      %c0_28 = arith.constant 0 : index
      %c0_29 = arith.constant 0 : index
      %32 = vector.load %arg9[%c0_28, %c0_29] : memref<128x128xbf16, #tpu.memory_space<vmem>>, vector<128x128xbf16>
      %cst_30 = arith.constant dense<0.000000e+00> : vector<8x128xf32>
      %33 = tpu.matmul %31, %32, %cst_30 {dimension_numbers = #tpu.dot_dimension_numbers<[1], [0], [0], [1], [0, 0, 1, 1], [], []>} : vector<8x128xbf16>, vector<128x128xbf16>, vector<8x128xf32> -> vector<8x128xf32>
      %34 = arith.addf %30, %33 : vector<8x128xf32>
      %c0_31 = arith.constant 0 : index
      %c0_32 = arith.constant 0 : index
      %35 = vector.load %arg10[%c0_31, %c0_32] : memref<1x128xf32, #tpu.memory_space<vmem>>, vector<1x128xf32>
      %36 = vector.broadcast %35 : vector<1x128xf32> to vector<8x128xf32>
      %37 = arith.addf %34, %36 : vector<8x128xf32>
      %cst_33 = arith.constant 0.000000e+00 : f32
      %38 = vector.broadcast %cst_33 : f32 to vector<8x128xf32>
      %39 = arith.maximumf %37, %38 : vector<8x128xf32>
      %40 = arith.truncf %39 : vector<8x128xf32> to vector<8x128xbf16>
      %c0_34 = arith.constant 0 : index
      %c0_35 = arith.constant 0 : index
      %41 = vector.load %arg11[%c0_34, %c0_35] : memref<128x128xbf16, #tpu.memory_space<vmem>>, vector<128x128xbf16>
      %cst_36 = arith.constant dense<0.000000e+00> : vector<8x128xf32>
      %42 = tpu.matmul %40, %41, %cst_36 {dimension_numbers = #tpu.dot_dimension_numbers<[1], [0], [0], [1], [0, 0, 1, 1], [], []>} : vector<8x128xbf16>, vector<128x128xbf16>, vector<8x128xf32> -> vector<8x128xf32>
      %c0_37 = arith.constant 0 : index
      %c0_38 = arith.constant 0 : index
      %43 = vector.load %arg12[%c0_37, %c0_38] : memref<1x128xf32, #tpu.memory_space<vmem>>, vector<1x128xf32>
      %44 = vector.broadcast %43 : vector<1x128xf32> to vector<8x128xf32>
      %45 = arith.addf %42, %44 : vector<8x128xf32>
      %cst_39 = arith.constant 0.000000e+00 : f32
      %46 = vector.broadcast %cst_39 : f32 to vector<8x128xf32>
      %47 = arith.maximumf %45, %46 : vector<8x128xf32>
      %48 = arith.truncf %47 : vector<8x128xf32> to vector<8x128xbf16>
      %c0_40 = arith.constant 0 : index
      %c0_41 = arith.constant 0 : index
      %49 = vector.load %arg13[%c0_40, %c0_41] : memref<128x128xbf16, #tpu.memory_space<vmem>>, vector<128x128xbf16>
      %cst_42 = arith.constant dense<0.000000e+00> : vector<8x128xf32>
      %50 = tpu.matmul %48, %49, %cst_42 {dimension_numbers = #tpu.dot_dimension_numbers<[1], [0], [0], [1], [0, 0, 1, 1], [], []>} : vector<8x128xbf16>, vector<128x128xbf16>, vector<8x128xf32> -> vector<8x128xf32>
      %c0_43 = arith.constant 0 : index
      %c0_44 = arith.constant 0 : index
      %51 = vector.load %arg14[%c0_43, %c0_44] : memref<1x128xf32, #tpu.memory_space<vmem>>, vector<1x128xf32>
      %52 = vector.broadcast %51 : vector<1x128xf32> to vector<8x128xf32>
      %53 = arith.addf %50, %52 : vector<8x128xf32>
      %54 = arith.truncf %53 : vector<8x128xf32> to vector<8x128xbf16>
      %c0_45 = arith.constant 0 : index
      %c0_46 = arith.constant 0 : index
      %55 = vector.load %arg16[%c0_45, %c0_46] : memref<8x128xbf16, #tpu.memory_space<vmem>>, vector<8x128xbf16>
      tpu.vector_store %arg16[%c0_45, %c0_46], %54 {strides = array<i32>} : memref<8x128xbf16, #tpu.memory_space<vmem>>, vector<8x128xbf16>,
    } else {
    }
    return
  }
  func.func @transform_0(%arg0: i32, %arg1: i32) -> (i32, i32) {
    %c0_i32 = arith.constant 0 : i32
    return %arg0, %arg1 : i32, i32
  }
  func.func @transform_1(%arg0: i32, %arg1: i32) -> (i32, i32) {
    %c0_i32 = arith.constant 0 : i32
    %c0_i32_0 = arith.constant 0 : i32
    return %arg0, %c0_i32 : i32, i32
  }
  func.func @transform_2(%arg0: i32, %arg1: i32) -> (i32, i32) {
    %c0_i32 = arith.constant 0 : i32
    %c0_i32_0 = arith.constant 0 : i32
    return %arg1, %c0_i32 : i32, i32
  }
  func.func @transform_3(%arg0: i32, %arg1: i32) -> (i32, i32) {
    %c0_i32 = arith.constant 0 : i32
    %c0_i32_0 = arith.constant 0 : i32
    %c0_i32_1 = arith.constant 0 : i32
    return %c0_i32, %c0_i32_0 : i32, i32
  }
  func.func @transform_4(%arg0: i32, %arg1: i32) -> (i32, i32) {
    %c0_i32 = arith.constant 0 : i32
    %c0_i32_0 = arith.constant 0 : i32
    %c0_i32_1 = arith.constant 0 : i32
    return %c0_i32, %c0_i32_0 : i32, i32
  }
  func.func @transform_5(%arg0: i32, %arg1: i32) -> (i32, i32) {
    %c0_i32 = arith.constant 0 : i32
    %c0_i32_0 = arith.constant 0 : i32
    %c0_i32_1 = arith.constant 0 : i32
    return %c0_i32, %c0_i32_0 : i32, i32
  }
  func.func @transform_6(%arg0: i32, %arg1: i32) -> (i32, i32) {
    %c0_i32 = arith.constant 0 : i32
    %c0_i32_0 = arith.constant 0 : i32
    %c0_i32_1 = arith.constant 0 : i32
    return %c0_i32, %c0_i32_0 : i32, i32
  }
  func.func @transform_7(%arg0: i32, %arg1: i32) -> (i32, i32) {
    %c0_i32 = arith.constant 0 : i32
    %c0_i32_0 = arith.constant 0 : i32
    %c0_i32_1 = arith.constant 0 : i32
    return %c0_i32, %c0_i32_0 : i32, i32
  }
  func.func @transform_8(%arg0: i32, %arg1: i32) -> (i32, i32) {
    %c0_i32 = arith.constant 0 : i32
    %c0_i32_0 = arith.constant 0 : i32
    %c0_i32_1 = arith.constant 0 : i32
    return %c0_i32, %c0_i32_0 : i32, i32
  }
  func.func @transform_9(%arg0: i32, %arg1: i32) -> (i32, i32) {
    %c0_i32 = arith.constant 0 : i32
    %c0_i32_0 = arith.constant 0 : i32
    %c0_i32_1 = arith.constant 0 : i32
    return %c0_i32, %c0_i32_0 : i32, i32
  }
  func.func @transform_10(%arg0: i32, %arg1: i32) -> (i32, i32) {
    %c0_i32 = arith.constant 0 : i32
    %c0_i32_0 = arith.constant 0 : i32
    %c0_i32_1 = arith.constant 0 : i32
    return %c0_i32, %c0_i32_0 : i32, i32
  }
  func.func @transform_11(%arg0: i32, %arg1: i32) -> (i32, i32) {
    %c0_i32 = arith.constant 0 : i32
    %c0_i32_0 = arith.constant 0 : i32
    %c0_i32_1 = arith.constant 0 : i32
    return %c0_i32, %c0_i32_0 : i32, i32
  }
  func.func @transform_12(%arg0: i32, %arg1: i32) -> (i32, i32) {
    %c0_i32 = arith.constant 0 : i32
    %c0_i32_0 = arith.constant 0 : i32
    %c0_i32_1 = arith.constant 0 : i32
    return %c0_i32, %c0_i32_0 : i32, i32
  }
  func.func @transform_13(%arg0: i32, %arg1: i32) -> (i32, i32) {
    %c0_i32 = arith.constant 0 : i32
    %c0_i32_0 = arith.constant 0 : i32
    return %arg0, %c0_i32 : i32, i32
  }
  func.func @transform_14(%arg0: i32, %arg1: i32) -> (i32, i32) {
    %c0_i32 = arith.constant 0 : i32
    %c0_i32_0 = arith.constant 0 : i32
    return %arg0, %c0_i32 : i32, i32
  }
}

</mosaic_0001>

<bundles_post_ra>
// kernel: forward_dynamics_pallas.1
= control target key start
LH: loop header
LB: loop body
LE: loop exit
PB: predicated region body
PF: predicated region fallthrough
CT: control target
= control target key end

     0   :  { %20 = vsyncpa [#allocation4], 0  ;;  %s1448_s0 = inlined_call_operand.vmem [shape: bf16[8,128], index: 0, kind: input, shape index: {}]   ;;  %s1449_s1 = inlined_call_operand.vmem [shape: bf16[8,128], index: 1, kind: input, shape index: {}]   ;;  %s1450_s2 = inlined_call_operand.hbm [shape: bf16[128,128], index: 2, kind: input, shape index: {}]   ;;  %s1451_s3 = inlined_call_operand.vmem [shape: f32[1,128], index: 3, kind: input, shape index: {}]   ;;  %s1452_s4 = inlined_call_operand.hbm [shape: bf16[128,128], index: 4, kind: input, shape index: {}]   ;;  %s1453_s5 = inlined_call_operand.vmem [shape: f32[1,128], index: 5, kind: input, shape index: {}]   ;;  %s1454_s6 = inlined_call_operand.hbm [shape: bf16[128,128], index: 6, kind: input, shape index: {}]   ;;  %s1455_s7 = inlined_call_operand.hbm [shape: bf16[128,128], index: 7, kind: input, shape index: {}]   ;;  %s1456_s8 = inlined_call_operand.vmem [shape: f32[1,128], index: 8, kind: input, shape index: {}]   ;;  %s1457_s9 = inlined_call_operand.hbm [shape: bf16[128,128], index: 9, kind: input, shape index: {}]   ;;  %s1458_s10 = inlined_call_operand.vmem [shape: f32[1,128], index: 10, kind: input, shape index: {}]   ;;  %s1459_s11 = inlined_call_operand.hbm [shape: bf16[128,128], index: 11, kind: input, shape index: {}]   ;;  %s1460_s12 = inlined_call_operand.vmem [shape: f32[1,128], index: 12, kind: input, shape index: {}]   ;;  %s1461_s13 = inlined_call_operand.vmem [shape: bf16[8,128], index: 13, kind: output, shape index: {0}]   ;;  %s1462_s14 = inlined_call_operand.vmem [shape: bf16[8,128], index: 14, kind: output, shape index: {1}]  }
   0x1   :  { %21 = vsyncpa [#allocation6], 0 }
   0x2   :  { %22 = vsyncpa [#allocation9], 0 }
   0x3   :  { %23 = vsyncpa [#allocation12], 0  ;;  %s1240_s29 = smov [#allocation5]   ;;  %s1241_s15 = smov [#allocation8]  }
   0x4   :  { %s47_s30 = sshll.u32 %s1240_s29, 4  ;;  %s73_s16 = sshll.u32 %s1241_s15, 4  ;;  %s48_s30 = int_to_ptr.vmem [resolvable:$true] %s47_s30  ;;  %s74_s16 = int_to_ptr.vmem [resolvable:$true] %s73_s16 }
   0x5   :  { %s1120_s17 = scalar_lea.vmem %s48_s30, 1024  ;;  %p1125_p1 = scmp.lt.s32.totalorder %s48_s30, %s48_s30 }
   0x6   :  { %p1121_p0 = scmp.ne.s32.totalorder %s48_s30, %s1120_s17  ;;  %p1126_p2 = scmp.lt.s32.totalorder %s1120_s17, %s1120_s17 }
   0x8   :  { %p1127_p3 = por %p1126_p2, %p1125_p1 }
   0xa   :  { %p1128_p4 = pnand %p1127_p3, %p1121_p0 }
   0xc   :  { %1131 = shalt.err (!%p1128_p4)
}
   0xd   :  { %s1242_s18 = smov 64   ;;  %s1243_s19 = smov 4  }
   0xe   :  { %53 = dma.hbm_to_vmem [thread:$0]  %s1452_s4, 1024, %s48_s30, [#allocation6], %s1242_s18, %s1242_s18, %s1243_s19  }
   0xf   :  { %s1140_s22 = scalar_lea.vmem %s74_s16, 1024  ;;  %p1145_p6 = scmp.lt.s32.totalorder %s74_s16, %s74_s16 }
  0x10   :  { %p1141_p5 = scmp.ne.s32.totalorder %s74_s16, %s1140_s22  ;;  %p1146_p7 = scmp.lt.s32.totalorder %s1140_s22, %s1140_s22 }
  0x12   :  { %p1147_p8 = por %p1146_p7, %p1145_p6 }
  0x14   :  { %p1148_p9 = pnand %p1147_p8, %p1141_p5 }
  0x16   :  { %1151 = shalt.err (!%p1148_p9)
}
  0x17   :  { %79 = dma.hbm_to_vmem [thread:$0]  %s1455_s7, 1024, %s74_s16, [#allocation9], %s1242_s18, %s1242_s18, %s1243_s19  }
  0x18   :  { %s1244_s25 = smov [#allocation3]   ;;  %s1245_s27 = smov [#allocation7]  }
  0x19   :  { %s33_s26 = sshll.u32 %s1244_s25, 4  ;;  %s61_s28 = sshll.u32 %s1245_s27, 4  ;;  %s34_s26 = int_to_ptr.vmem [resolvable:$true] %s33_s26  ;;  %s62_s28 = int_to_ptr.vmem [resolvable:$true] %s61_s28 }
  0x1a   :  { %s1160_s4 = scalar_lea.vmem %s34_s26, 1024  ;;  %p1165_p11 = scmp.lt.s32.totalorder %s34_s26, %s34_s26 }
  0x1b   :  { %p1161_p10 = scmp.ne.s32.totalorder %s34_s26, %s1160_s4  ;;  %p1166_p12 = scmp.lt.s32.totalorder %s1160_s4, %s1160_s4 }
  0x1d   :  { %p1167_p13 = por %p1166_p12, %p1165_p11 }
  0x1f   :  { %p1168_p0 = pnand %p1167_p13, %p1161_p10 }
  0x21   :  { %1171 = shalt.err (!%p1168_p0)
}
  0x22   :  { %39 = dma.hbm_to_vmem [thread:$0]  %s1450_s2, 1024, %s34_s26, [#allocation4], %s1242_s18, %s1242_s18, %s1243_s19  }
  0x23   :  { %s1180_s7 = scalar_lea.vmem %s62_s28, 1024  ;;  %p1185_p2 = scmp.lt.s32.totalorder %s62_s28, %s62_s28 }
  0x24   :  { %p1181_p1 = scmp.ne.s32.totalorder %s62_s28, %s1180_s7  ;;  %p1186_p3 = scmp.lt.s32.totalorder %s1180_s7, %s1180_s7 }
  0x26   :  { %p1187_p4 = por %p1186_p3, %p1185_p2 }
  0x28   :  { %p1188_p5 = pnand %p1187_p4, %p1181_p1 }
  0x2a   :  { %1191 = shalt.err (!%p1188_p5)
}
  0x2b   :  { %67 = dma.hbm_to_vmem [thread:$0]  %s1454_s6, 1024, %s62_s28, [#allocation6], %s1242_s18, %s1242_s18, %s1243_s19  }
  0x2c   :  { %s1246_s17 = smov [#allocation10]   ;;  %s1247_s21 = smov [#allocation11]  }
  0x2d   :  { %s87_s20 = sshll.u32 %s1246_s17, 4  ;;  %s101_s22 = sshll.u32 %s1247_s21, 4  ;;  %s88_s20 = int_to_ptr.vmem [resolvable:$true] %s87_s20  ;;  %s102_s22 = int_to_ptr.vmem [resolvable:$true] %s101_s22 }
  0x2e   :  { %s1200_s2 = scalar_lea.vmem %s88_s20, 1024  ;;  %p1205_p7 = scmp.lt.s32.totalorder %s88_s20, %s88_s20 }
  0x2f   :  { %p1201_p6 = scmp.ne.s32.totalorder %s88_s20, %s1200_s2  ;;  %p1206_p8 = scmp.lt.s32.totalorder %s1200_s2, %s1200_s2 }
  0x31   :  { %p1207_p9 = por %p1206_p8, %p1205_p7 }
  0x33   :  { %p1208_p10 = pnand %p1207_p9, %p1201_p6 }
  0x35   :  { %1211 = shalt.err (!%p1208_p10)
}
  0x36   :  { %93 = dma.hbm_to_vmem [thread:$0]  %s1457_s9, 1024, %s88_s20, [#allocation9], %s1242_s18, %s1242_s18, %s1243_s19  }
  0x37   :  { %s1220_s6 = scalar_lea.vmem %s102_s22, 1024  ;;  %p1225_p12 = scmp.lt.s32.totalorder %s102_s22, %s102_s22 }
  0x38   :  { %p1221_p11 = scmp.ne.s32.totalorder %s102_s22, %s1220_s6  ;;  %p1226_p13 = scmp.lt.s32.totalorder %s1220_s6, %s1220_s6 }
  0x3a   :  { %p1227_p0 = por %p1226_p13, %p1225_p12 }
  0x3c   :  { %p1228_p1 = pnand %p1227_p0, %p1221_p11 }
  0x3e   :  { %1231 = shalt.err (!%p1228_p1)
}
  0x3f   :  { %107 = dma.hbm_to_vmem [thread:$0]  %s1459_s11, 1024, %s102_s22, [#allocation12], %s1242_s18, %s1242_s18, %s1243_s19  }
  0x40   :  { %1232 = dma.done.wait [#allocation4], 1024  }
  0x41   :  { %1233 = vsyncadd [#allocation4], 4294966272 }
  0x42   :  { %1234 = dma.done.wait [#allocation6], 2048  }
  0x43   :  { %1235 = vsyncadd [#allocation6], 4294965248 }
  0x44   :  { %1236 = dma.done.wait [#allocation9], 2048  }
  0x45   :  { %1237 = vsyncadd [#allocation9], 4294965248 }
  0x46   :  { %1238 = dma.done.wait [#allocation12], 1024  }
  0x47   :  { %1239 = vsyncadd [#allocation12], 4294966272  ;;  %v1248_v0 = vmov 0.0   ;;  %vm1249_vm0 = vmmov 0   ;;  %v1064_v1 = vld [vmem:[#allocation3 + $0x38] sm:$0xff]   ;;  %v1065_v2 = vld [vmem:[#allocation3 + $0x30] sm:$0xff]  }
  0x48   :  { %934 = vmatprep.subr.bf16.mxu0 %v1248_v0  ;;  %950 = vmatprep.mubr.msk.bf16.mxu0 %vm1249_vm0, %v1248_v0  ;;  %v1066_v3 = vld [vmem:[#allocation3 + $0x28] sm:$0xff]   ;;  %v1072_v4 = vld [vmem:[#allocation5 + $0x38] sm:$0xff]   ;;  %v1067_v5 = vld [vmem:[#allocation3 + $0x20] sm:$0xff]  }
  0x49   :  { %954 = vmatprep.subr.bf16.mxu1 %v1248_v0  ;;  %970 = vmatprep.mubr.msk.bf16.mxu1 %vm1249_vm0, %v1248_v0  ;;  %v1073_v6 = vld [vmem:[#allocation5 + $0x30] sm:$0xff]   ;;  %v1068_v7 = vld [vmem:[#allocation3 + $0x18] sm:$0xff]   ;;  %v1074_v8 = vld [vmem:[#allocation5 + $0x28] sm:$0xff]  }
  0x4a   :  { %935 = vmatpush3.bf16.msra.mxu0 %v1064_v1  ;;  %955 = vmatpush3.bf16.msra.mxu1 %v1072_v4  ;;  %v1069_v9 = vld [vmem:[#allocation3 + $0x10] sm:$0xff]   ;;  %v1075_v10 = vld [vmem:[#allocation5 + $0x20] sm:$0xff]   ;;  %v1070_v11 = vld [vmem:[#allocation3 + $0x8] sm:$0xff]  }
  0x4b   :  { %936 = vmatprep.subr.bf16.mxu0 %v1248_v0  ;;  %956 = vmatprep.subr.bf16.mxu1 %v1248_v0  ;;  %v1076_v12 = vld [vmem:[#allocation5 + $0x18] sm:$0xff]   ;;  %v1071_v13 = vld [vmem:[#allocation3] sm:$0xff]   ;;  %v1077_v14 = vld [vmem:[#allocation5 + $0x10] sm:$0xff]  }
  0x4c   :  { %v135_v15 = vld [vmem:[%s1448_s0] sm:$0xf]  ;;  %v1078_v16 = vld [vmem:[#allocation5 + $0x8] sm:$0xff]   ;;  %v1080_v18 = vld [vmem:[#allocation8 + $0x38] sm:$0xff]  }
  0x4d   :  { %v1079_v17 = vld [vmem:[#allocation5] sm:$0xff]   ;;  %v1081_v19 = vld [vmem:[#allocation8 + $0x30] sm:$0xff]   ;;  %v1083_v20 = vld [vmem:[#allocation8 + $0x28] sm:$0xff]  }
  0x4e   :  { %937 = vmatpush3.bf16.msra.mxu0 %v1065_v2  ;;  %957 = vmatpush3.bf16.msra.mxu1 %v1073_v6  ;;  %v1085_v21 = vld [vmem:[#allocation8 + $0x20] sm:$0xff]   ;;  %v1087_v22 = vld [vmem:[#allocation8 + $0x18] sm:$0xff]   ;;  %v1089_v23 = vld [vmem:[#allocation8 + $0x10] sm:$0xff]  }
  0x4f   :  { %938 = vmatprep.subr.bf16.mxu0 %v1248_v0  ;;  %958 = vmatprep.subr.bf16.mxu1 %v1248_v0  ;;  %v1091_v24 = vld [vmem:[#allocation8 + $0x8] sm:$0xff]   ;;  %v1093_v25 = vld [vmem:[#allocation8] sm:$0xff]   ;;  %v1082_v32 = vld [vmem:[#allocation7 + $0x38] sm:$0xff]  }
  0x50   :  { %v835_v26 = vld [vmem:[%s1451_s3] ss:$0 sm:$0xff]  ;;  %v1084_v35 = vld [vmem:[#allocation7 + $0x30] sm:$0xff]   ;;  %v1086_v36 = vld [vmem:[#allocation7 + $0x28] sm:$0xff]  }
  0x51   :  { %v1088_v37 = vld [vmem:[#allocation7 + $0x20] sm:$0xff]   ;;  %v1090_v38 = vld [vmem:[#allocation7 + $0x18] sm:$0xff]   ;;  %v1092_v39 = vld [vmem:[#allocation7 + $0x10] sm:$0xff]  }
  0x52   :  { %939 = vmatpush3.bf16.msra.mxu0 %v1066_v3  ;;  %959 = vmatpush3.bf16.msra.mxu1 %v1074_v8  ;;  %v1094_v40 = vld [vmem:[#allocation7 + $0x8] sm:$0xff]   ;;  %v386_v41 = vld [vmem:[%s1449_s1] sm:$0xf]  ;;  %v1096_v43 = vld [vmem:[#allocation10 + $0x38] sm:$0xff]  }
  0x53   :  { %940 = vmatprep.subr.bf16.mxu0 %v1248_v0  ;;  %960 = vmatprep.subr.bf16.mxu1 %v1248_v0  ;;  %v1095_v42 = vld [vmem:[#allocation7] sm:$0xff]   ;;  %v1097_v44 = vld [vmem:[#allocation10 + $0x30] sm:$0xff]   ;;  %v1098_v45 = vld [vmem:[#allocation10 + $0x28] sm:$0xff]  }
  0x54   :  { %v1099_v46 = vld [vmem:[#allocation10 + $0x20] sm:$0xff]   ;;  %v1100_v47 = vld [vmem:[#allocation10 + $0x18] sm:$0xff]   ;;  %v1101_v48 = vld [vmem:[#allocation10 + $0x10] sm:$0xff]  }
  0x55   :  { %v836_v49 = vld [vmem:[%s1453_s5] ss:$0 sm:$0xff]  ;;  %v1102_v61 = vld [vmem:[#allocation10 + $0x8] sm:$0xff]   ;;  %v1104_v63 = vld [vmem:[#allocation11 + $0x38] sm:$0xff]  }
  0x56   :  { %941 = vmatpush3.bf16.msra.mxu0 %v1067_v5  ;;  %961 = vmatpush3.bf16.msra.mxu1 %v1075_v10  ;;  %v1103_v62 = vld [vmem:[#allocation10] sm:$0xff]   ;;  %v1105_v1 = vld [vmem:[#allocation11 + $0x30] sm:$0xff]   ;;  %v1106_v2 = vld [vmem:[#allocation11 + $0x28] sm:$0xff]  }
  0x57   :  { %942 = vmatprep.subr.bf16.mxu0 %v1248_v0  ;;  %962 = vmatprep.subr.bf16.mxu1 %v1248_v0  ;;  %v1107_v3 = vld [vmem:[#allocation11 + $0x20] sm:$0xff]   ;;  %v1108_v4 = vld [vmem:[#allocation11 + $0x18] sm:$0xff]   ;;  %v1109_v5 = vld [vmem:[#allocation11 + $0x10] sm:$0xff]  }
  0x5a   :  { %943 = vmatpush3.bf16.msra.mxu0 %v1068_v7  ;;  %963 = vmatpush3.bf16.msra.mxu1 %v1076_v12  ;;  %v861_v7 = vld [vmem:[%s1456_s8] ss:$0 sm:$0xff] }
  0x5b   :  { %944 = vmatprep.subr.bf16.mxu0 %v1248_v0  ;;  %964 = vmatprep.subr.bf16.mxu1 %v1248_v0 }
  0x5e   :  { %945 = vmatpush3.bf16.msra.mxu0 %v1069_v9  ;;  %965 = vmatpush3.bf16.msra.mxu1 %v1077_v14 }
  0x5f   :  { %946 = vmatprep.subr.bf16.mxu0 %v1248_v0  ;;  %966 = vmatprep.subr.bf16.mxu1 %v1248_v0 }
  0x62   :  { %947 = vmatpush3.bf16.msra.mxu0 %v1070_v11  ;;  %967 = vmatpush3.bf16.msra.mxu1 %v1078_v16  ;;  %v1111_v16 = vld [vmem:[#allocation11] sm:$0xff]  }
  0x63   :  { %948 = vmatprep.subr.bf16.mxu0 %v1248_v0  ;;  %968 = vmatprep.subr.bf16.mxu1 %v1248_v0 }
  0x66   :  { %949 = vmatpush3.bf16.msra.mxu0 %v1071_v13  ;;  %969 = vmatpush3.bf16.msra.mxu1 %v1079_v17  ;;  %v862_v17 = vld [vmem:[%s1458_s10] ss:$0 sm:$0xff] }
  0x67   :  { %974 = vmatprep.subr.bf16.mxu0 %v1248_v0  ;;  %994 = vmatprep.subr.bf16.mxu1 %v1248_v0 }
  0x69   :  { %951 = vmatmul.mubr.bf16.vlgmr.msra.gmra.mxu0 %v135_v15  ;;  %v1110_v15 = vld [vmem:[#allocation11 + $0x8] sm:$0xff]  }
  0x6a   :  { %990 = vmatprep.mubr.msk.bf16.mxu0 %vm1249_vm0, %v1248_v0  ;;  %975 = vmatpush3.bf16.msra.mxu0 %v1080_v18 }
  0x6b   :  { %976 = vmatprep.subr.bf16.mxu0 %v1248_v0 }
  0x6e   :  { %977 = vmatpush3.bf16.msra.mxu0 %v1081_v19 }
  0x6f   :  { %978 = vmatprep.subr.bf16.mxu0 %v1248_v0 }
  0x72   :  { %979 = vmatpush3.bf16.msra.mxu0 %v1083_v20 }
  0x73   :  { %980 = vmatprep.subr.bf16.mxu0 %v1248_v0 }
  0x76   :  { %981 = vmatpush3.bf16.msra.mxu0 %v1085_v21 }
  0x77   :  { %982 = vmatprep.subr.bf16.mxu0 %v1248_v0 }
  0x7a   :  { %983 = vmatpush3.bf16.msra.mxu0 %v1087_v22 }
  0x7b   :  { %984 = vmatprep.subr.bf16.mxu0 %v1248_v0 }
  0x7e   :  { %985 = vmatpush3.bf16.msra.mxu0 %v1089_v23 }
  0x7f   :  { %986 = vmatprep.subr.bf16.mxu0 %v1248_v0 }
  0x82   :  { %987 = vmatpush3.bf16.msra.mxu0 %v1091_v24 }
  0x83   :  { %988 = vmatprep.subr.bf16.mxu0 %v1248_v0 }
  0x86   :  { %989 = vmatpush3.bf16.msra.mxu0 %v1093_v25  ;;  %v871_v25 = vld [vmem:[%s1460_s12] ss:$0 sm:$0xff] }
  0x87   :  { %1014 = vmatprep.subr.bf16.mxu0 %v1248_v0 }
  0x89   :  { %991 = vmatmul.mubr.bf16.vlgmr.msra.gmra.mxu0 %v386_v41 }
  0x8a   :  { %1030 = vmatprep.mubr.msk.bf16.mxu0 %vm1249_vm0, %v1248_v0  ;;  %1015 = vmatpush3.bf16.msra.mxu0 %v1096_v43 }
  0x8b   :  { %1016 = vmatprep.subr.bf16.mxu0 %v1248_v0 }
  0x8e   :  { %1017 = vmatpush3.bf16.msra.mxu0 %v1097_v44 }
  0x8f   :  { %1018 = vmatprep.subr.bf16.mxu0 %v1248_v0 }
  0x92   :  { %1019 = vmatpush3.bf16.msra.mxu0 %v1098_v45 }
  0x93   :  { %1020 = vmatprep.subr.bf16.mxu0 %v1248_v0 }
  0x96   :  { %1021 = vmatpush3.bf16.msra.mxu0 %v1099_v46 }
  0x97   :  { %1022 = vmatprep.subr.bf16.mxu0 %v1248_v0 }
  0x9a   :  { %1023 = vmatpush3.bf16.msra.mxu0 %v1100_v47 }
  0x9b   :  { %1024 = vmatprep.subr.bf16.mxu0 %v1248_v0 }
  0x9e   :  { %1025 = vmatpush3.bf16.msra.mxu0 %v1101_v48 }
  0x9f   :  { %1026 = vmatprep.subr.bf16.mxu0 %v1248_v0 }
  0xa2   :  { %1027 = vmatpush3.bf16.msra.mxu0 %v1102_v61 }
  0xa3   :  { %1028 = vmatprep.subr.bf16.mxu0 %v1248_v0 }
  0xa6   :  { %1029 = vmatpush3.bf16.msra.mxu0 %v1103_v62 }
 0x129   :  { %v234_v27 = vpop.f32.mrf.mxu0 }
 0x12a   :  { %v253_v28 = vadd.f32 %v835_v26, %v234_v27 }
 0x12b   :  { %v952_v29 = vpop.f32.mrf.mxu0 }
 0x12c   :  { %v254_v30 = vmax.f32 %v253_v28, 0.0 }
 0x12d   :  { %v237_v31 = vpop.f32.mrf.mxu0 }
 0x12e   :  { %v255_v33 = vpack.c.bf16 %v254_v30, %v254_v30 }
 0x12f   :  { %v953_v34 = vpop.f32.mrf.mxu0 }
 0x130   :  { %971 = vmatmul.mubr.bf16.vlgmr.msra.gmra.mxu1 %v255_v33 }
 0x131   :  { %995 = vmatpush3.bf16.msra.mxu1 %v1082_v32  ;;  %1010 = vmatprep.mubr.msk.bf16.mxu1 %vm1249_vm0, %v1248_v0 }
 0x132   :  { %996 = vmatprep.subr.bf16.mxu1 %v1248_v0 }
 0x135   :  { %997 = vmatpush3.bf16.msra.mxu1 %v1084_v35 }
 0x136   :  { %998 = vmatprep.subr.bf16.mxu1 %v1248_v0 }
 0x139   :  { %999 = vmatpush3.bf16.msra.mxu1 %v1086_v36 }
 0x13a   :  { %1000 = vmatprep.subr.bf16.mxu1 %v1248_v0 }
 0x13d   :  { %1001 = vmatpush3.bf16.msra.mxu1 %v1088_v37 }
 0x13e   :  { %1002 = vmatprep.subr.bf16.mxu1 %v1248_v0 }
 0x141   :  { %1003 = vmatpush3.bf16.msra.mxu1 %v1090_v38 }
 0x142   :  { %1004 = vmatprep.subr.bf16.mxu1 %v1248_v0 }
 0x145   :  { %1005 = vmatpush3.bf16.msra.mxu1 %v1092_v39 }
 0x146   :  { %1006 = vmatprep.subr.bf16.mxu1 %v1248_v0 }
 0x149   :  { %1007 = vmatpush3.bf16.msra.mxu1 %v1094_v40  ;;  %v485_v57 = vpop.f32.mrf.mxu0 }
 0x14a   :  { %1008 = vmatprep.subr.bf16.mxu1 %v1248_v0 }
 0x14b   :  { %v992_v58 = vpop.f32.mrf.mxu0 }
 0x14d   :  { %1009 = vmatpush3.bf16.msra.mxu1 %v1095_v42  ;;  %v488_v59 = vpop.f32.mrf.mxu0 }
 0x14e   :  { %1034 = vmatprep.subr.bf16.mxu1 %v1248_v0 }
 0x14f   :  { %v993_v60 = vpop.f32.mrf.mxu0 }
 0x1f0   :  { %v361_v50 = vpop.f32.mrf.mxu1 }
 0x1f1   :  { %v362_v51 = vadd.f32 %v836_v49, %v361_v50 }
 0x1f2   :  { %v972_v52 = vpop.f32.mrf.mxu1 }
 0x1f3   :  { %v367_v53 = vmax.f32 %v362_v51, 0.0 }
 0x1f4   :  { %v364_v54 = vpop.f32.mrf.mxu1 }
 0x1f5   :  { %v368_v55 = vpack.c.bf16 %v367_v53, %v367_v53 }
 0x1f6   :  { %v973_v56 = vpop.f32.mrf.mxu1 }
 0x1f7   :  { %369 = vst [vmem:[%s1461_s13] sm:$0xf] %v368_v55  ;;  %1011 = vmatmul.mubr.bf16.vlgmr.msra.gmra.mxu1 %v368_v55 }
 0x1f8   :  { %1050 = vmatprep.mubr.msk.bf16.mxu1 %vm1249_vm0, %v1248_v0  ;;  %1035 = vmatpush3.bf16.msra.mxu1 %v1104_v63 }
 0x1f9   :  { %1036 = vmatprep.subr.bf16.mxu1 %v1248_v0 }
 0x1fc   :  { %1037 = vmatpush3.bf16.msra.mxu1 %v1105_v1 }
 0x1fd   :  { %1038 = vmatprep.subr.bf16.mxu1 %v1248_v0 }
 0x200   :  { %1039 = vmatpush3.bf16.msra.mxu1 %v1106_v2 }
 0x201   :  { %1040 = vmatprep.subr.bf16.mxu1 %v1248_v0 }
 0x204   :  { %1041 = vmatpush3.bf16.msra.mxu1 %v1107_v3 }
 0x205   :  { %1042 = vmatprep.subr.bf16.mxu1 %v1248_v0 }
 0x208   :  { %1043 = vmatpush3.bf16.msra.mxu1 %v1108_v4 }
 0x209   :  { %1044 = vmatprep.subr.bf16.mxu1 %v1248_v0 }
 0x20c   :  { %1045 = vmatpush3.bf16.msra.mxu1 %v1109_v5 }
 0x20d   :  { %1046 = vmatprep.subr.bf16.mxu1 %v1248_v0 }
 0x210   :  { %1047 = vmatpush3.bf16.msra.mxu1 %v1110_v15 }
 0x211   :  { %1048 = vmatprep.subr.bf16.mxu1 %v1248_v0 }
 0x214   :  { %1049 = vmatpush3.bf16.msra.mxu1 %v1111_v16 }
 0x2b7   :  { %v573_v6 = vpop.f32.mrf.mxu1 }
 0x2b8   :  { %v574_v8 = vadd.f32 %v573_v6, %v485_v57 }
 0x2b9   :  { %v1012_v9 = vpop.f32.mrf.mxu1 }
 0x2ba   :  { %v586_v10 = vadd.f32 %v861_v7, %v574_v8 }
 0x2bb   :  { %v576_v11 = vpop.f32.mrf.mxu1 }
 0x2bc   :  { %v587_v12 = vmax.f32 %v586_v10, 0.0 }
 0x2bd   :  { %v1013_v13 = vpop.f32.mrf.mxu1 }
 0x2be   :  { %v588_v14 = vpack.c.bf16 %v587_v12, %v587_v12 }
 0x2c0   :  { %1031 = vmatmul.mubr.bf16.vlgmr.msra.gmra.mxu0 %v588_v14 }
 0x380   :  { %v694_v18 = vpop.f32.mrf.mxu0 }
 0x381   :  { %v695_v19 = vadd.f32 %v862_v17, %v694_v18 }
 0x382   :  { %v1032_v20 = vpop.f32.mrf.mxu0 }
 0x383   :  { %v700_v21 = vmax.f32 %v695_v19, 0.0 }
 0x384   :  { %v697_v22 = vpop.f32.mrf.mxu0 }
 0x385   :  { %v701_v23 = vpack.c.bf16 %v700_v21, %v700_v21 }
 0x386   :  { %v1033_v24 = vpop.f32.mrf.mxu0 }
 0x387   :  { %1051 = vmatmul.mubr.bf16.vlgmr.msra.gmra.mxu1 %v701_v23 }
 0x447   :  { %v807_v26 = vpop.f32.mrf.mxu1 }
 0x448   :  { %v808_v0 = vadd.f32 %v871_v25, %v807_v26 }
 0x449   :  { %v1052_v27 = vpop.f32.mrf.mxu1 }
 0x44a   :  { %v813_v28 = vpack.c.bf16 %v808_v0, %v808_v0 }
 0x44b   :  { %v810_v29 = vpop.f32.mrf.mxu1 }
 0x44c   :  { %814 = vst [vmem:[%s1462_s14] sm:$0xf] %v813_v28 }
 0x44d   :  { %v1053_v30 = vpop.f32.mrf.mxu1 }
 0x44e   :  { %823 = vsyncpa [#allocation4], 1 }
 0x44f   :  { %824 = vsyncpa [#allocation6], 1 }
 0x450   :  { %825 = vsyncpa [#allocation9], 1 }
 0x451   :  { %826 = vsyncpa [#allocation12], 1 }

// kernel: forward_dynamics_pallas.1
= control target key start
LH: loop header
LB: loop body
LE: loop exit
PB: predicated region body
PF: predicated region fallthrough
CT: control target
= control target key end

     0   :  { %20 = vsyncpa [#allocation4], 0  ;;  %s1448_s0 = inlined_call_operand.vmem [shape: bf16[8,128], index: 0, kind: input, shape index: {}]   ;;  %s1449_s1 = inlined_call_operand.vmem [shape: bf16[8,128], index: 1, kind: input, shape index: {}]   ;;  %s1450_s2 = inlined_call_operand.hbm [shape: bf16[128,128], index: 2, kind: input, shape index: {}]   ;;  %s1451_s3 = inlined_call_operand.vmem [shape: f32[1,128], index: 3, kind: input, shape index: {}]   ;;  %s1452_s4 = inlined_call_operand.hbm [shape: bf16[128,128], index: 4, kind: input, shape index: {}]   ;;  %s1453_s5 = inlined_call_operand.vmem [shape: f32[1,128], index: 5, kind: input, shape index: {}]   ;;  %s1454_s6 = inlined_call_operand.hbm [shape: bf16[128,128], index: 6, kind: input, shape index: {}]   ;;  %s1455_s7 = inlined_call_operand.hbm [shape: bf16[128,128], index: 7, kind: input, shape index: {}]   ;;  %s1456_s8 = inlined_call_operand.vmem [shape: f32[1,128], index: 8, kind: input, shape index: {}]   ;;  %s1457_s9 = inlined_call_operand.hbm [shape: bf16[128,128], index: 9, kind: input, shape index: {}]   ;;  %s1458_s10 = inlined_call_operand.vmem [shape: f32[1,128], index: 10, kind: input, shape index: {}]   ;;  %s1459_s11 = inlined_call_operand.hbm [shape: bf16[128,128], index: 11, kind: input, shape index: {}]   ;;  %s1460_s12 = inlined_call_operand.vmem [shape: f32[1,128], index: 12, kind: input, shape index: {}]   ;;  %s1461_s13 = inlined_call_operand.vmem [shape: bf16[8,128], index: 13, kind: output, shape index: {0}]   ;;  %s1462_s14 = inlined_call_operand.vmem [shape: bf16[8,128], index: 14, kind: output, shape index: {1}]  }
   0x1   :  { %21 = vsyncpa [#allocation6], 0 }
   0x2   :  { %22 = vsyncpa [#allocation9], 0 }
   0x3   :  { %23 = vsyncpa [#allocation12], 0  ;;  %s1240_s29 = smov [#allocation5]   ;;  %s1241_s15 = smov [#allocation8]  }
   0x4   :  { %s47_s30 = sshll.u32 %s1240_s29, 4  ;;  %s73_s16 = sshll.u32 %s1241_s15, 4  ;;  %s48_s30 = int_to_ptr.vmem [resolvable:$true] %s47_s30  ;;  %s74_s16 = int_to_ptr.vmem [resolvable:$true] %s73_s16 }
   0x5   :  { %s1120_s17 = scalar_lea.vmem %s48_s30, 1024  ;;  %p1125_p1 = scmp.lt.s32.totalorder %s48_s30, %s48_s30 }
   0x6   :  { %p1121_p0 = scmp.ne.s32.totalorder %s48_s30, %s1120_s17  ;;  %p1126_p2 = scmp.lt.s32.totalorder %s1120_s17, %s1120_s17 }
   0x8   :  { %p1127_p3 = por %p1126_p2, %p1125_p1 }
   0xa   :  { %p1128_p4 = pnand %p1127_p3, %p1121_p0 }
   0xc   :  { %1131 = shalt.err (!%p1128_p4)
}
   0xd   :  { %s1242_s18 = smov 64   ;;  %s1243_s19 = smov 4  }
   0xe   :  { %53 = dma.hbm_to_vmem [thread:$0]  %s1452_s4, 1024, %s48_s30, [#allocation6], %s1242_s18, %s1242_s18, %s1243_s19  }
   0xf   :  { %s1140_s22 = scalar_lea.vmem %s74_s16, 1024  ;;  %p1145_p6 = scmp.lt.s32.totalorder %s74_s16, %s74_s16 }
  0x10   :  { %p1141_p5 = scmp.ne.s32.totalorder %s74_s16, %s1140_s22  ;;  %p1146_p7 = scmp.lt.s32.totalorder %s1140_s22, %s1140_s22 }
  0x12   :  { %p1147_p8 = por %p1146_p7, %p1145_p6 }
  0x14   :  { %p1148_p9 = pnand %p1147_p8, %p1141_p5 }
  0x16   :  { %1151 = shalt.err (!%p1148_p9)
}
  0x17   :  { %79 = dma.hbm_to_vmem [thread:$0]  %s1455_s7, 1024, %s74_s16, [#allocation9], %s1242_s18, %s1242_s18, %s1243_s19  }
  0x18   :  { %s1244_s25 = smov [#allocation3]   ;;  %s1245_s27 = smov [#allocation7]  }
  0x19   :  { %s33_s26 = sshll.u32 %s1244_s25, 4  ;;  %s61_s28 = sshll.u32 %s1245_s27, 4  ;;  %s34_s26 = int_to_ptr.vmem [resolvable:$true] %s33_s26  ;;  %s62_s28 = int_to_ptr.vmem [resolvable:$true] %s61_s28 }
  0x1a   :  { %s1160_s4 = scalar_lea.vmem %s34_s26, 1024  ;;  %p1165_p11 = scmp.lt.s32.totalorder %s34_s26, %s34_s26 }
  0x1b   :  { %p1161_p10 = scmp.ne.s32.totalorder %s34_s26, %s1160_s4  ;;  %p1166_p12 = scmp.lt.s32.totalorder %s1160_s4, %s1160_s4 }
  0x1d   :  { %p1167_p13 = por %p1166_p12, %p1165_p11 }
  0x1f   :  { %p1168_p0 = pnand %p1167_p13, %p1161_p10 }
  0x21   :  { %1171 = shalt.err (!%p1168_p0)
}
  0x22   :  { %39 = dma.hbm_to_vmem [thread:$0]  %s1450_s2, 1024, %s34_s26, [#allocation4], %s1242_s18, %s1242_s18, %s1243_s19  }
  0x23   :  { %s1180_s7 = scalar_lea.vmem %s62_s28, 1024  ;;  %p1185_p2 = scmp.lt.s32.totalorder %s62_s28, %s62_s28 }
  0x24   :  { %p1181_p1 = scmp.ne.s32.totalorder %s62_s28, %s1180_s7  ;;  %p1186_p3 = scmp.lt.s32.totalorder %s1180_s7, %s1180_s7 }
  0x26   :  { %p1187_p4 = por %p1186_p3, %p1185_p2 }
  0x28   :  { %p1188_p5 = pnand %p1187_p4, %p1181_p1 }
  0x2a   :  { %1191 = shalt.err (!%p1188_p5)
}
  0x2b   :  { %67 = dma.hbm_to_vmem [thread:$0]  %s1454_s6, 1024, %s62_s28, [#allocation6], %s1242_s18, %s1242_s18, %s1243_s19  }
  0x2c   :  { %s1246_s17 = smov [#allocation10]   ;;  %s1247_s21 = smov [#allocation11]  }
  0x2d   :  { %s87_s20 = sshll.u32 %s1246_s17, 4  ;;  %s101_s22 = sshll.u32 %s1247_s21, 4  ;;  %s88_s20 = int_to_ptr.vmem [resolvable:$true] %s87_s20  ;;  %s102_s22 = int_to_ptr.vmem [resolvable:$true] %s101_s22 }
  0x2e   :  { %s1200_s2 = scalar_lea.vmem %s88_s20, 1024  ;;  %p1205_p7 = scmp.lt.s32.totalorder %s88_s20, %s88_s20 }
  0x2f   :  { %p1201_p6 = scmp.ne.s32.totalorder %s88_s20, %s1200_s2  ;;  %p1206_p8 = scmp.lt.s32.totalorder %s1200_s2, %s1200_s2 }
  0x31   :  { %p1207_p9 = por %p1206_p8, %p1205_p7 }
  0x33   :  { %p1208_p10 = pnand %p1207_p9, %p1201_p6 }
  0x35   :  { %1211 = shalt.err (!%p1208_p10)
}
  0x36   :  { %93 = dma.hbm_to_vmem [thread:$0]  %s1457_s9, 1024, %s88_s20, [#allocation9], %s1242_s18, %s1242_s18, %s1243_s19  }
  0x37   :  { %s1220_s6 = scalar_lea.vmem %s102_s22, 1024  ;;  %p1225_p12 = scmp.lt.s32.totalorder %s102_s22, %s102_s22 }
  0x38   :  { %p1221_p11 = scmp.ne.s32.totalorder %s102_s22, %s1220_s6  ;;  %p1226_p13 = scmp.lt.s32.totalorder %s1220_s6, %s1220_s6 }
  0x3a   :  { %p1227_p0 = por %p1226_p13, %p1225_p12 }
  0x3c   :  { %p1228_p1 = pnand %p1227_p0, %p1221_p11 }
  0x3e   :  { %1231 = shalt.err (!%p1228_p1)
}
  0x3f   :  { %107 = dma.hbm_to_vmem [thread:$0]  %s1459_s11, 1024, %s102_s22, [#allocation12], %s1242_s18, %s1242_s18, %s1243_s19  }
  0x40   :  { %1232 = dma.done.wait [#allocation4], 1024  }
  0x41   :  { %1233 = vsyncadd [#allocation4], 4294966272 }
  0x42   :  { %1234 = dma.done.wait [#allocation6], 2048  }
  0x43   :  { %1235 = vsyncadd [#allocation6], 4294965248 }
  0x44   :  { %1236 = dma.done.wait [#allocation9], 2048  }
  0x45   :  { %1237 = vsyncadd [#allocation9], 4294965248 }
  0x46   :  { %1238 = dma.done.wait [#allocation12], 1024  }
  0x47   :  { %1239 = vsyncadd [#allocation12], 4294966272  ;;  %v1248_v0 = vmov 0.0   ;;  %vm1249_vm0 = vmmov 0   ;;  %v1064_v1 = vld [vmem:[#allocation3 + $0x38] sm:$0xff]   ;;  %v1065_v2 = vld [vmem:[#allocation3 + $0x30] sm:$0xff]  }
  0x48   :  { %934 = vmatprep.subr.bf16.mxu0 %v1248_v0  ;;  %950 = vmatprep.mubr.msk.bf16.mxu0 %vm1249_vm0, %v1248_v0  ;;  %v1066_v3 = vld [vmem:[#allocation3 + $0x28] sm:$0xff]   ;;  %v1072_v4 = vld [vmem:[#allocation5 + $0x38] sm:$0xff]   ;;  %v1067_v5 = vld [vmem:[#allocation3 + $0x20] sm:$0xff]  }
  0x49   :  { %954 = vmatprep.subr.bf16.mxu1 %v1248_v0  ;;  %970 = vmatprep.mubr.msk.bf16.mxu1 %vm1249_vm0, %v1248_v0  ;;  %v1073_v6 = vld [vmem:[#allocation5 + $0x30] sm:$0xff]   ;;  %v1068_v7 = vld [vmem:[#allocation3 + $0x18] sm:$0xff]   ;;  %v1074_v8 = vld [vmem:[#allocation5 + $0x28] sm:$0xff]  }
  0x4a   :  { %935 = vmatpush3.bf16.msra.mxu0 %v1064_v1  ;;  %955 = vmatpush3.bf16.msra.mxu1 %v1072_v4  ;;  %v1069_v9 = vld [vmem:[#allocation3 + $0x10] sm:$0xff]   ;;  %v1075_v10 = vld [vmem:[#allocation5 + $0x20] sm:$0xff]   ;;  %v1070_v11 = vld [vmem:[#allocation3 + $0x8] sm:$0xff]  }
  0x4b   :  { %936 = vmatprep.subr.bf16.mxu0 %v1248_v0  ;;  %956 = vmatprep.subr.bf16.mxu1 %v1248_v0  ;;  %v1076_v12 = vld [vmem:[#allocation5 + $0x18] sm:$0xff]   ;;  %v1071_v13 = vld [vmem:[#allocation3] sm:$0xff]   ;;  %v1077_v14 = vld [vmem:[#allocation5 + $0x10] sm:$0xff]  }
  0x4c   :  { %v135_v15 = vld [vmem:[%s1448_s0] sm:$0xf]  ;;  %v1078_v16 = vld [vmem:[#allocation5 + $0x8] sm:$0xff]   ;;  %v1080_v18 = vld [vmem:[#allocation8 + $0x38] sm:$0xff]  }
  0x4d   :  { %v1079_v17 = vld [vmem:[#allocation5] sm:$0xff]   ;;  %v1081_v19 = vld [vmem:[#allocation8 + $0x30] sm:$0xff]   ;;  %v1083_v20 = vld [vmem:[#allocation8 + $0x28] sm:$0xff]  }
  0x4e   :  { %937 = vmatpush3.bf16.msra.mxu0 %v1065_v2  ;;  %957 = vmatpush3.bf16.msra.mxu1 %v1073_v6  ;;  %v1085_v21 = vld [vmem:[#allocation8 + $0x20] sm:$0xff]   ;;  %v1087_v22 = vld [vmem:[#allocation8 + $0x18] sm:$0xff]   ;;  %v1089_v23 = vld [vmem:[#allocation8 + $0x10] sm:$0xff]  }
  0x4f   :  { %938 = vmatprep.subr.bf16.mxu0 %v1248_v0  ;;  %958 = vmatprep.subr.bf16.mxu1 %v1248_v0  ;;  %v1091_v24 = vld [vmem:[#allocation8 + $0x8] sm:$0xff]   ;;  %v1093_v25 = vld [vmem:[#allocation8] sm:$0xff]   ;;  %v1082_v32 = vld [vmem:[#allocation7 + $0x38] sm:$0xff]  }
  0x50   :  { %v835_v26 = vld [vmem:[%s1451_s3] ss:$0 sm:$0xff]  ;;  %v1084_v35 = vld [vmem:[#allocation7 + $0x30] sm:$0xff]   ;;  %v1086_v36 = vld [vmem:[#allocation7 + $0x28] sm:$0xff]  }
  0x51   :  { %v1088_v37 = vld [vmem:[#allocation7 + $0x20] sm:$0xff]   ;;  %v1090_v38 = vld [vmem:[#allocation7 + $0x18] sm:$0xff]   ;;  %v1092_v39 = vld [vmem:[#allocation7 + $0x10] sm:$0xff]  }
  0x52   :  { %939 = vmatpush3.bf16.msra.mxu0 %v1066_v3  ;;  %959 = vmatpush3.bf16.msra.mxu1 %v1074_v8  ;;  %v1094_v40 = vld [vmem:[#allocation7 + $0x8] sm:$0xff]   ;;  %v386_v41 = vld [vmem:[%s1449_s1] sm:$0xf]  ;;  %v1096_v43 = vld [vmem:[#allocation10 + $0x38] sm:$0xff]  }
  0x53   :  { %940 = vmatprep.subr.bf16.mxu0 %v1248_v0  ;;  %960 = vmatprep.subr.bf16.mxu1 %v1248_v0  ;;  %v1095_v42 = vld [vmem:[#allocation7] sm:$0xff]   ;;  %v1097_v44 = vld [vmem:[#allocation10 + $0x30] sm:$0xff]   ;;  %v1098_v45 = vld [vmem:[#allocation10 + $0x28] sm:$0xff]  }
  0x54   :  { %v1099_v46 = vld [vmem:[#allocation10 + $0x20] sm:$0xff]   ;;  %v1100_v47 = vld [vmem:[#allocation10 + $0x18] sm:$0xff]   ;;  %v1101_v48 = vld [vmem:[#allocation10 + $0x10] sm:$0xff]  }
  0x55   :  { %v836_v49 = vld [vmem:[%s1453_s5] ss:$0 sm:$0xff]  ;;  %v1102_v61 = vld [vmem:[#allocation10 + $0x8] sm:$0xff]   ;;  %v1104_v63 = vld [vmem:[#allocation11 + $0x38] sm:$0xff]  }
  0x56   :  { %941 = vmatpush3.bf16.msra.mxu0 %v1067_v5  ;;  %961 = vmatpush3.bf16.msra.mxu1 %v1075_v10  ;;  %v1103_v62 = vld [vmem:[#allocation10] sm:$0xff]   ;;  %v1105_v1 = vld [vmem:[#allocation11 + $0x30] sm:$0xff]   ;;  %v1106_v2 = vld [vmem:[#allocation11 + $0x28] sm:$0xff]  }
  0x57   :  { %942 = vmatprep.subr.bf16.mxu0 %v1248_v0  ;;  %962 = vmatprep.subr.bf16.mxu1 %v1248_v0  ;;  %v1107_v3 = vld [vmem:[#allocation11 + $0x20] sm:$0xff]   ;;  %v1108_v4 = vld [vmem:[#allocation11 + $0x18] sm:$0xff]   ;;  %v1109_v5 = vld [vmem:[#allocation11 + $0x10] sm:$0xff]  }
  0x5a   :  { %943 = vmatpush3.bf16.msra.mxu0 %v1068_v7  ;;  %963 = vmatpush3.bf16.msra.mxu1 %v1076_v12  ;;  %v861_v7 = vld [vmem:[%s1456_s8] ss:$0 sm:$0xff] }
  0x5b   :  { %944 = vmatprep.subr.bf16.mxu0 %v1248_v0  ;;  %964 = vmatprep.subr.bf16.mxu1 %v1248_v0 }
  0x5e   :  { %945 = vmatpush3.bf16.msra.mxu0 %v1069_v9  ;;  %965 = vmatpush3.bf16.msra.mxu1 %v1077_v14 }
  0x5f   :  { %946 = vmatprep.subr.bf16.mxu0 %v1248_v0  ;;  %966 = vmatprep.subr.bf16.mxu1 %v1248_v0 }
  0x62   :  { %947 = vmatpush3.bf16.msra.mxu0 %v1070_v11  ;;  %967 = vmatpush3.bf16.msra.mxu1 %v1078_v16  ;;  %v1111_v16 = vld [vmem:[#allocation11] sm:$0xff]  }
  0x63   :  { %948 = vmatprep.subr.bf16.mxu0 %v1248_v0  ;;  %968 = vmatprep.subr.bf16.mxu1 %v1248_v0 }
  0x66   :  { %949 = vmatpush3.bf16.msra.mxu0 %v1071_v13  ;;  %969 = vmatpush3.bf16.msra.mxu1 %v1079_v17  ;;  %v862_v17 = vld [vmem:[%s1458_s10] ss:$0 sm:$0xff] }
  0x67   :  { %974 = vmatprep.subr.bf16.mxu0 %v1248_v0  ;;  %994 = vmatprep.subr.bf16.mxu1 %v1248_v0 }
  0x69   :  { %951 = vmatmul.mubr.bf16.vlgmr.msra.gmra.mxu0 %v135_v15  ;;  %v1110_v15 = vld [vmem:[#allocation11 + $0x8] sm:$0xff]  }
  0x6a   :  { %990 = vmatprep.mubr.msk.bf16.mxu0 %vm1249_vm0, %v1248_v0  ;;  %975 = vmatpush3.bf16.msra.mxu0 %v1080_v18 }
  0x6b   :  { %976 = vmatprep.subr.bf16.mxu0 %v1248_v0 }
  0x6e   :  { %977 = vmatpush3.bf16.msra.mxu0 %v1081_v19 }
  0x6f   :  { %978 = vmatprep.subr.bf16.mxu0 %v1248_v0 }
  0x72   :  { %979 = vmatpush3.bf16.msra.mxu0 %v1083_v20 }
  0x73   :  { %980 = vmatprep.subr.bf16.mxu0 %v1248_v0 }
  0x76   :  { %981 = vmatpush3.bf16.msra.mxu0 %v1085_v21 }
  0x77   :  { %982 = vmatprep.subr.bf16.mxu0 %v1248_v0 }
  0x7a   :  { %983 = vmatpush3.bf16.msra.mxu0 %v1087_v22 }
  0x7b   :  { %984 = vmatprep.subr.bf16.mxu0 %v1248_v0 }
  0x7e   :  { %985 = vmatpush3.bf16.msra.mxu0 %v1089_v23 }
  0x7f   :  { %986 = vmatprep.subr.bf16.mxu0 %v1248_v0 }
  0x82   :  { %987 = vmatpush3.bf16.msra.mxu0 %v1091_v24 }
  0x83   :  { %988 = vmatprep.subr.bf16.mxu0 %v1248_v0 }
  0x86   :  { %989 = vmatpush3.bf16.msra.mxu0 %v1093_v25  ;;  %v871_v25 = vld [vmem:[%s1460_s12] ss:$0 sm:$0xff] }
  0x87   :  { %1014 = vmatprep.subr.bf16.mxu0 %v1248_v0 }
  0x89   :  { %991 = vmatmul.mubr.bf16.vlgmr.msra.gmra.mxu0 %v386_v41 }
  0x8a   :  { %1030 = vmatprep.mubr.msk.bf16.mxu0 %vm1249_vm0, %v1248_v0  ;;  %1015 = vmatpush3.bf16.msra.mxu0 %v1096_v43 }
  0x8b   :  { %1016 = vmatprep.subr.bf16.mxu0 %v1248_v0 }
  0x8e   :  { %1017 = vmatpush3.bf16.msra.mxu0 %v1097_v44 }
  0x8f   :  { %1018 = vmatprep.subr.bf16.mxu0 %v1248_v0 }
  0x92   :  { %1019 = vmatpush3.bf16.msra.mxu0 %v1098_v45 }
  0x93   :  { %1020 = vmatprep.subr.bf16.mxu0 %v1248_v0 }
  0x96   :  { %1021 = vmatpush3.bf16.msra.mxu0 %v1099_v46 }
  0x97   :  { %1022 = vmatprep.subr.bf16.mxu0 %v1248_v0 }
  0x9a   :  { %1023 = vmatpush3.bf16.msra.mxu0 %v1100_v47 }
  0x9b   :  { %1024 = vmatprep.subr.bf16.mxu0 %v1248_v0 }
  0x9e   :  { %1025 = vmatpush3.bf16.msra.mxu0 %v1101_v48 }
  0x9f   :  { %1026 = vmatprep.subr.bf16.mxu0 %v1248_v0 }
  0xa2   :  { %1027 = vmatpush3.bf16.msra.mxu0 %v1102_v61 }
  0xa3   :  { %1028 = vmatprep.subr.bf16.mxu0 %v1248_v0 }
  0xa6   :  { %1029 = vmatpush3.bf16.msra.mxu0 %v1103_v62 }
 0x129   :  { %v234_v27 = vpop.f32.mrf.mxu0 }
 0x12a   :  { %v253_v28 = vadd.f32 %v835_v26, %v234_v27 }
 0x12b   :  { %v952_v29 = vpop.f32.mrf.mxu0 }
 0x12c   :  { %v254_v30 = vmax.f32 %v253_v28, 0.0 }
 0x12d   :  { %v237_v31 = vpop.f32.mrf.mxu0 }
 0x12e   :  { %v255_v33 = vpack.c.bf16 %v254_v30, %v254_v30 }
 0x12f   :  { %v953_v34 = vpop.f32.mrf.mxu0 }
 0x130   :  { %971 = vmatmul.mubr.bf16.vlgmr.msra.gmra.mxu1 %v255_v33 }
 0x131   :  { %995 = vmatpush3.bf16.msra.mxu1 %v1082_v32  ;;  %1010 = vmatprep.mubr.msk.bf16.mxu1 %vm1249_vm0, %v1248_v0 }
 0x132   :  { %996 = vmatprep.subr.bf16.mxu1 %v1248_v0 }
 0x135   :  { %997 = vmatpush3.bf16.msra.mxu1 %v1084_v35 }
 0x136   :  { %998 = vmatprep.subr.bf16.mxu1 %v1248_v0 }
 0x139   :  { %999 = vmatpush3.bf16.msra.mxu1 %v1086_v36 }
 0x13a   :  { %1000 = vmatprep.subr.bf16.mxu1 %v1248_v0 }
 0x13d   :  { %1001 = vmatpush3.bf16.msra.mxu1 %v1088_v37 }
 0x13e   :  { %1002 = vmatprep.subr.bf16.mxu1 %v1248_v0 }
 0x141   :  { %1003 = vmatpush3.bf16.msra.mxu1 %v1090_v38 }
 0x142   :  { %1004 = vmatprep.subr.bf16.mxu1 %v1248_v0 }
 0x145   :  { %1005 = vmatpush3.bf16.msra.mxu1 %v1092_v39 }
 0x146   :  { %1006 = vmatprep.subr.bf16.mxu1 %v1248_v0 }
 0x149   :  { %1007 = vmatpush3.bf16.msra.mxu1 %v1094_v40  ;;  %v485_v57 = vpop.f32.mrf.mxu0 }
 0x14a   :  { %1008 = vmatprep.subr.bf16.mxu1 %v1248_v0 }
 0x14b   :  { %v992_v58 = vpop.f32.mrf.mxu0 }
 0x14d   :  { %1009 = vmatpush3.bf16.msra.mxu1 %v1095_v42  ;;  %v488_v59 = vpop.f32.mrf.mxu0 }
 0x14e   :  { %1034 = vmatprep.subr.bf16.mxu1 %v1248_v0 }
 0x14f   :  { %v993_v60 = vpop.f32.mrf.mxu0 }
 0x1f0   :  { %v361_v50 = vpop.f32.mrf.mxu1 }
 0x1f1   :  { %v362_v51 = vadd.f32 %v836_v49, %v361_v50 }
 0x1f2   :  { %v972_v52 = vpop.f32.mrf.mxu1 }
 0x1f3   :  { %v367_v53 = vmax.f32 %v362_v51, 0.0 }
 0x1f4   :  { %v364_v54 = vpop.f32.mrf.mxu1 }
 0x1f5   :  { %v368_v55 = vpack.c.bf16 %v367_v53, %v367_v53 }
 0x1f6   :  { %v973_v56 = vpop.f32.mrf.mxu1 }
 0x1f7   :  { %369 = vst [vmem:[%s1461_s13] sm:$0xf] %v368_v55  ;;  %1011 = vmatmul.mubr.bf16.vlgmr.msra.gmra.mxu1 %v368_v55 }
 0x1f8   :  { %1050 = vmatprep.mubr.msk.bf16.mxu1 %vm1249_vm0, %v1248_v0  ;;  %1035 = vmatpush3.bf16.msra.mxu1 %v1104_v63 }
 0x1f9   :  { %1036 = vmatprep.subr.bf16.mxu1 %v1248_v0 }
 0x1fc   :  { %1037 = vmatpush3.bf16.msra.mxu1 %v1105_v1 }
 0x1fd   :  { %1038 = vmatprep.subr.bf16.mxu1 %v1248_v0 }
 0x200   :  { %1039 = vmatpush3.bf16.msra.mxu1 %v1106_v2 }
 0x201   :  { %1040 = vmatprep.subr.bf16.mxu1 %v1248_v0 }
 0x204   :  { %1041 = vmatpush3.bf16.msra.mxu1 %v1107_v3 }
 0x205   :  { %1042 = vmatprep.subr.bf16.mxu1 %v1248_v0 }
 0x208   :  { %1043 = vmatpush3.bf16.msra.mxu1 %v1108_v4 }
 0x209   :  { %1044 = vmatprep.subr.bf16.mxu1 %v1248_v0 }
 0x20c   :  { %1045 = vmatpush3.bf16.msra.mxu1 %v1109_v5 }
 0x20d   :  { %1046 = vmatprep.subr.bf16.mxu1 %v1248_v0 }
 0x210   :  { %1047 = vmatpush3.bf16.msra.mxu1 %v1110_v15 }
 0x211   :  { %1048 = vmatprep.subr.bf16.mxu1 %v1248_v0 }
 0x214   :  { %1049 = vmatpush3.bf16.msra.mxu1 %v1111_v16 }
 0x2b7   :  { %v573_v6 = vpop.f32.mrf.mxu1 }
 0x2b8   :  { %v574_v8 = vadd.f32 %v573_v6, %v485_v57 }
 0x2b9   :  { %v1012_v9 = vpop.f32.mrf.mxu1 }
 0x2ba   :  { %v586_v10 = vadd.f32 %v861_v7, %v574_v8 }
 0x2bb   :  { %v576_v11 = vpop.f32.mrf.mxu1 }
 0x2bc   :  { %v587_v12 = vmax.f32 %v586_v10, 0.0 }
 0x2bd   :  { %v1013_v13 = vpop.f32.mrf.mxu1 }
 0x2be   :  { %v588_v14 = vpack.c.bf16 %v587_v12, %v587_v12 }
 0x2c0   :  { %1031 = vmatmul.mubr.bf16.vlgmr.msra.gmra.mxu0 %v588_v14 }
 0x380   :  { %v694_v18 = vpop.f32.mrf.mxu0 }
 0x381   :  { %v695_v19 = vadd.f32 %v862_v17, %v694_v18 }
 0x382   :  { %v1032_v20 = vpop.f32.mrf.mxu0 }
 0x383   :  { %v700_v21 = vmax.f32 %v695_v19, 0.0 }
 0x384   :  { %v697_v22 = vpop.f32.mrf.mxu0 }
 0x385   :  { %v701_v23 = vpack.c.bf16 %v700_v21, %v700_v21 }
 0x386   :  { %v1033_v24 = vpop.f32.mrf.mxu0 }
 0x387   :  { %1051 = vmatmul.mubr.bf16.vlgmr.msra.gmra.mxu1 %v701_v23 }
 0x447   :  { %v807_v26 = vpop.f32.mrf.mxu1 }
 0x448   :  { %v808_v0 = vadd.f32 %v871_v25, %v807_v26 }
 0x449   :  { %v1052_v27 = vpop.f32.mrf.mxu1 }
 0x44a   :  { %v813_v28 = vpack.c.bf16 %v808_v0, %v808_v0 }
 0x44b   :  { %v810_v29 = vpop.f32.mrf.mxu1 }
 0x44c   :  { %814 = vst [vmem:[%s1462_s14] sm:$0xf] %v813_v28 }
 0x44d   :  { %v1053_v30 = vpop.f32.mrf.mxu1 }
 0x44e   :  { %823 = vsyncpa [#allocation4], 1 }
 0x44f   :  { %824 = vsyncpa [#allocation6], 1 }
 0x450   :  { %825 = vsyncpa [#allocation9], 1 }
 0x451   :  { %826 = vsyncpa [#allocation12], 1 }

</bundles_post_ra>
